<compile_context>
chip_gen: v6e
topology: v6e:2x2x1
jax: 0.10.0
libtpu: 0.0.40
codegen_flags: <defaults>
</compile_context>

<pallas_src>
import functools

import numpy as np
import jax
import jax.numpy as jnp
from jax.experimental import pallas as pl
from jax.experimental.pallas import tpu as pltpu


def lmhca_kernel(x_ref, w1_ref, wdp_ref, whp_ref, bhp_ref, wqp_ref, bqp_ref,
                 o_ref, a_pad_ref, v_pad_ref, *,
                 num_heads, num_queries, head_dim, win, img_w):
    # x_ref:   (1, S, C)  bf16, channels-last flattened image
    # w1_ref:  (C, NQD+P) bf16   [v-weights tiled per query | k-weights]
    # wdp_ref: (P, NQD)   bf16   dot_product weights, repeated per head_dim
    # whp_ref: (NQD, Q*D) bf16   head_proj fused (block-diag over queries)
    # bhp_ref: (1, Q*D)   f32
    # wqp_ref: (Q*D, C)   bf16   query_proj
    # bqp_ref: (1, C)     f32
    # o_ref:   (1, S, C)  f32
    # a_pad_ref / v_pad_ref: (S + 2*PADR, NQD) f32 zero-padded VMEM scratch
    S = x_ref.shape[1]
    pad = win // 2
    L = win * win
    NQD = num_heads * num_queries * head_dim
    PADR = pad * img_w + pad          # max |flat shift| of a 3x3 window offset

    # ---- projections (MXU, bf16 operands, f32 accumulation) ----
    x = x_ref[0]                                                      # (S, C)
    kv = jnp.dot(x, w1_ref[...], preferred_element_type=jnp.float32)  # (S, NQD+P)
    v_big = kv[:, :NQD]            # values, already tiled per query: col=(n,q,d)
    k = kv[:, NQD:]                # (S, P)
    a_big = jnp.dot(k.astype(jnp.bfloat16), wdp_ref[...],
                    preferred_element_type=jnp.float32)               # (S, NQD)

    # ---- zero-padded flat scratch: every window offset is a static slice ----
    a_pad_ref[...] = jnp.zeros(a_pad_ref.shape, jnp.float32)
    v_pad_ref[...] = jnp.zeros(v_pad_ref.shape, jnp.float32)
    a_pad_ref[pl.ds(PADR, S), :] = a_big
    v_pad_ref[pl.ds(PADR, S), :] = v_big

    # Column-validity masks for horizontal offsets (zero-pad semantics of
    # F.pad + unfold: out-of-image window slots contribute logit 0 / value 0).
    col = jax.lax.broadcasted_iota(jnp.int32, (S, 1), 0) % img_w
    col_mask = {0: None}
    for oj in range(-pad, pad + 1):
        if oj != 0:
            valid = jnp.logical_and(col + oj >= 0, col + oj < img_w)
            col_mask[oj] = valid.astype(jnp.float32)

    def window(pad_ref, l, apply_mask=True):
        oi, oj = l // win - pad, l % win - pad
        start = PADR + oi * img_w + oj              # static python int
        sl = pad_ref[pl.ds(start, S), :]            # (S, NQD)
        if apply_mask and col_mask[oj] is not None:
            sl = sl * col_mask[oj]
        return sl

    # ---- softmax over the L window slots + weighted sum, all at (S, NQD) ----
    # Running max (softmax is shift-invariant, so the cheaper unmasked max is
    # fine; it only affects numerical conditioning, not the result).
    m = window(a_pad_ref, 0, apply_mask=False)
    for l in range(1, L):
        m = jnp.maximum(m, window(a_pad_ref, l, apply_mask=False))

    acc = jnp.zeros((S, NQD), jnp.float32)
    denom = jnp.zeros((S, NQD), jnp.float32)
    for l in range(L):
        # masked border logits are exactly 0 -> exp(0 - m), matching PyTorch's
        # zero-padded unfold; border values are exactly 0 as well.
        e = jnp.exp(window(a_pad_ref, l) - m)
        denom = denom + e
        acc = acc + e * window(v_pad_ref, l)
    acc = acc * pl.reciprocal(denom, approx=True)   # == out[s, n, q, d]

    # ---- head_proj (fused over queries) + query_proj ----
    feat = jnp.dot(acc.astype(jnp.bfloat16), whp_ref[...],
                   preferred_element_type=jnp.float32) + bhp_ref[...]   # (S, Q*D)
    out = jnp.dot(feat.astype(jnp.bfloat16), wqp_ref[...],
                  preferred_element_type=jnp.float32) + bqp_ref[...]    # (S, C)
    o_ref[0] = out.astype(o_ref.dtype)


def lmhca_pallas(x, w_kv, w_dp, w_hp, b_hp, w_qp, b_qp, *,
                 num_heads, num_queries, head_dim, win):
    """NCHW in, NCHW out.  Weights in the same (in, out) matmul convention as
    the pure-JAX reference below (w_kv: (C, 2P), w_dp: (P, N*Q), ...)."""
    B, C, H, W = x.shape
    S = H * W
    P = num_heads * head_dim
    QD = num_queries * head_dim
    NQD = num_heads * QD
    pad = win // 2
    PADR = pad * W + pad

    # --- one-time weight re-layout (exact column duplication / block placement) ---
    w_k = w_kv[:, :P]                                     # (C, P)
    w_v = w_kv[:, P:]                                     # (C, P)
    # value columns tiled per query -> accumulator layout (n, q, d)
    w_v_big = jnp.broadcast_to(
        w_v.reshape(C, num_heads, 1, head_dim),
        (C, num_heads, num_queries, head_dim)).reshape(C, NQD)
    w1 = jnp.concatenate([w_v_big, w_k], axis=1)          # (C, NQD + P)
    # dot_product columns repeated per head_dim -> same (n, q, d) layout
    w_dp_big = jnp.repeat(w_dp, head_dim, axis=1)         # (P, NQD)
    # head_proj fused over the query axis: block-diagonal (NQD, Q*D) weight
    eye_q = jnp.eye(num_queries, dtype=w_hp.dtype)
    w_hp_big = jnp.einsum(
        'qr,ndk->nqdrk', eye_q,
        w_hp.reshape(num_heads, head_dim, head_dim)).reshape(NQD, QD)
    b_hp_big = jnp.tile(b_hp.reshape(1, head_dim), (1, num_queries))  # (1, Q*D)

    # bf16 MXU operands (accumulation stays f32 inside the kernel)
    x_bsc = x.transpose(0, 2, 3, 1).reshape(B, S, C).astype(jnp.bfloat16)
    args = (x_bsc,
            w1.astype(jnp.bfloat16),
            w_dp_big.astype(jnp.bfloat16),
            w_hp_big.astype(jnp.bfloat16),
            b_hp_big.astype(jnp.float32),
            w_qp.astype(jnp.bfloat16),
            b_qp.reshape(1, C).astype(jnp.float32))

    kernel = functools.partial(lmhca_kernel, num_heads=num_heads,
                               num_queries=num_queries, head_dim=head_dim,
                               win=win, img_w=W)

    def full_spec(arr):
        nd = arr.ndim
        return pl.BlockSpec(arr.shape, lambda i, _nd=nd: (0,) * _nd)

    out_flat = pl.pallas_call(
        kernel,
        out_shape=jax.ShapeDtypeStruct((B, S, C), jnp.float32),
        grid=(B,),
        in_specs=[pl.BlockSpec((1, S, C), lambda i: (i, 0, 0))]
                 + [full_spec(a) for a in args[1:]],
        out_specs=pl.BlockSpec((1, S, C), lambda i: (i, 0, 0)),
        scratch_shapes=[pltpu.VMEM((S + 2 * PADR, NQD), jnp.float32),
                        pltpu.VMEM((S + 2 * PADR, NQD), jnp.float32)],
        compiler_params=pltpu.CompilerParams(
            dimension_semantics=("parallel",)),
    )(*args)

    # (B, S, C) -> NCHW
    return out_flat.reshape(B, H, W, C).transpose(0, 3, 1, 2)


def lmhca_reference(x, w_kv, w_dp, w_hp, b_hp, w_qp, b_qp,
                    *, num_heads, num_queries, head_dim, win, pad):
    """Pure-JAX (f32) mirror of the PyTorch forward (NCHW in, NCHW out)."""
    b, c, h, w = x.shape
    P = num_heads * head_dim
    L = win * win
    kv = jnp.einsum('bchw,co->bohw', x, w_kv)
    k, v = kv[:, :P], kv[:, P:]
    attn = jnp.einsum('bchw,co->bohw', k, w_dp)

    def unfold(t):
        tp = jnp.pad(t, ((0, 0), (0, 0), (pad, pad), (pad, pad)))
        return jnp.stack([tp[:, :, di:di + h, dj:dj + w]
                          for di in range(win) for dj in range(win)], axis=-1)

    a_w = unfold(attn)                                              # (b, NQ, h, w, L)
    v_w = unfold(v)                                                 # (b, P,  h, w, L)
    a_w = a_w.reshape(b, num_heads, num_queries, h, w, L).transpose(0, 1, 3, 4, 2, 5)
    v_w = v_w.reshape(b, num_heads, head_dim, h, w, L).transpose(0, 1, 3, 4, 5, 2)
    p = jax.nn.softmax(a_w, axis=-1)
    out = jnp.einsum('bnhwql,bnhwld->bnhwqd', p, v_w)
    out = out.transpose(0, 4, 1, 5, 2, 3).reshape(b * num_queries, P, h, w)
    ho = jnp.einsum('bchw,cd->bdhw', out, w_hp) + b_hp.reshape(1, -1, 1, 1)
    ho = ho.reshape(b, num_queries * head_dim, h, w)
    return jnp.einsum('bchw,co->bohw', ho, w_qp) + b_qp.reshape(1, -1, 1, 1)


if __name__ == "__main__":
    # module hyper-parameters (small, consistent with LMHCA.__init__)
    dim = 32
    H = W = 8
    B = 2
    num_heads = 2
    num_queries = 4
    head_dim = 16
    win = 3
    pad = win // 2
    P = num_heads * head_dim
    S = H * W

    key = jax.random.PRNGKey(0)
    ks = jax.random.split(key, 8)

    def q_bf16(a):
        # keep parameters / inputs bf16-representable so the bf16-operand MXU
        # path can be checked against the f32 reference at a tight tolerance
        return a.astype(jnp.bfloat16).astype(jnp.float32)

    x = q_bf16(jax.random.normal(ks[0], (B, dim, H, W), jnp.float32))   # NCHW

    # deterministic synthetic parameters (shapes the torch convs imply)
    w_kv = q_bf16(0.1 * jax.random.normal(ks[1], (dim, 2 * P), jnp.float32))
    # grouped 1x1 conv (groups=num_heads) -> block-diagonal channel matrix
    w_dp_g = 0.1 * jax.random.normal(ks[2], (num_heads, head_dim, num_queries),
                                     jnp.float32)
    w_dp_np = np.zeros((P, num_heads * num_queries), np.float32)
    for n in range(num_heads):
        w_dp_np[n * head_dim:(n + 1) * head_dim,
                n * num_queries:(n + 1) * num_queries] = np.asarray(w_dp_g[n])
    w_dp = q_bf16(jnp.asarray(w_dp_np))
    w_hp = q_bf16(0.1 * jax.random.normal(ks[3], (P, head_dim), jnp.float32))
    b_hp = q_bf16(0.1 * jax.random.normal(ks[4], (1, head_dim), jnp.float32))
    w_qp = q_bf16(0.1 * jax.random.normal(ks[5], (num_queries * head_dim, dim),
                                          jnp.float32))
    b_qp = q_bf16(0.1 * jax.random.normal(ks[6], (1, dim), jnp.float32))
    # dropout prob is 0.0 in the module -> identity (nothing to do)

    out = lmhca_pallas(x, w_kv, w_dp, w_hp, b_hp, w_qp, b_qp,
                       num_heads=num_heads, num_queries=num_queries,
                       head_dim=head_dim, win=win)
    out = jax.block_until_ready(out)

    ref = lmhca_reference(x, w_kv, w_dp, w_hp, b_hp, w_qp, b_qp,
                          num_heads=num_heads, num_queries=num_queries,
                          head_dim=head_dim, win=win, pad=pad)
    ref = jax.block_until_ready(ref)

    if not bool(jnp.all(jnp.isfinite(out))):
        raise AssertionError("non-finite output")
    # tolerance sized for bf16 MXU operands + EUP approx reciprocal vs f32 ref
    if not bool(jnp.allclose(out, ref, atol=2e-2, rtol=2e-2)):
        raise AssertionError(
            f"mismatch vs reference, max abs err = "
            f"{float(jnp.max(jnp.abs(out - ref))):.3e}")

    print("KERNEL_OK")
</pallas_src>

<mosaic_0001>
module attributes {stable_mosaic.version = 11 : i64} {
  func.func @lmhca_kernel(%arg0: i32, %arg1: memref<1x64x32xbf16, #tpu.memory_space<vmem>>, %arg2: memref<32x160xbf16, #tpu.memory_space<vmem>>, %arg3: memref<32x128xbf16, #tpu.memory_space<vmem>>, %arg4: memref<128x64xbf16, #tpu.memory_space<vmem>>, %arg5: memref<1x64xf32, #tpu.memory_space<vmem>>, %arg6: memref<64x32xbf16, #tpu.memory_space<vmem>>, %arg7: memref<1x32xf32, #tpu.memory_space<vmem>>, %arg8: memref<1x64x32xf32, #tpu.memory_space<vmem>>, %arg9: memref<82x128xf32, #tpu.memory_space<vmem>>, %arg10: memref<82x128xf32, #tpu.memory_space<vmem>>) attributes {dimension_semantics = [#tpu.dimension_semantics<parallel>], iteration_bounds = array<i64: 2>, scalar_prefetch = 0 : i64, scratch_operands = 2 : i64, tpu.core_type = #tpu.core_type<tc>, window_params = [{transform_indices = @transform_0, window_bounds = array<i64: 1, 64, 32>}, {pipeline_mode = #tpu.pipeline_mode<synchronous>, transform_indices = @transform_1, window_bounds = array<i64: 32, 160>}, {pipeline_mode = #tpu.pipeline_mode<synchronous>, transform_indices = @transform_2, window_bounds = array<i64: 32, 128>}, {pipeline_mode = #tpu.pipeline_mode<synchronous>, transform_indices = @transform_3, window_bounds = array<i64: 128, 64>}, {pipeline_mode = #tpu.pipeline_mode<synchronous>, transform_indices = @transform_4, window_bounds = array<i64: 1, 64>}, {pipeline_mode = #tpu.pipeline_mode<synchronous>, transform_indices = @transform_5, window_bounds = array<i64: 64, 32>}, {pipeline_mode = #tpu.pipeline_mode<synchronous>, transform_indices = @transform_6, window_bounds = array<i64: 1, 32>}, {transform_indices = @transform_7, window_bounds = array<i64: 1, 64, 32>}]} {
    %c0 = arith.constant 0 : index
    %c0_0 = arith.constant 0 : index
    %c0_1 = arith.constant 0 : index
    %0 = vector.load %arg1[%c0, %c0_0, %c0_1] : memref<1x64x32xbf16, #tpu.memory_space<vmem>>, vector<1x64x32xbf16>
    %1 = vector.shape_cast %0 : vector<1x64x32xbf16> to vector<64x32xbf16>
    %c0_2 = arith.constant 0 : index
    %c0_3 = arith.constant 0 : index
    %2 = vector.load %arg2[%c0_2, %c0_3] : memref<32x160xbf16, #tpu.memory_space<vmem>>, vector<32x160xbf16>
    %cst = arith.constant dense<0.000000e+00> : vector<64x160xf32>
    %3 = tpu.matmul %1, %2, %cst {dimension_numbers = #tpu.dot_dimension_numbers<[1], [0], [0], [1], [0, 0, 1, 1], [], []>} : vector<64x32xbf16>, vector<32x160xbf16>, vector<64x160xf32> -> vector<64x160xf32>
    %4 = vector.extract_strided_slice %3 {offsets = [0, 0], sizes = [64, 128], strides = [1, 1]} : vector<64x160xf32> to vector<64x128xf32>
    %5 = vector.extract_strided_slice %3 {offsets = [0, 128], sizes = [64, 32], strides = [1, 1]} : vector<64x160xf32> to vector<64x32xf32>
    %6 = arith.truncf %5 : vector<64x32xf32> to vector<64x32xbf16>
    %c0_4 = arith.constant 0 : index
    %c0_5 = arith.constant 0 : index
    %7 = vector.load %arg3[%c0_4, %c0_5] : memref<32x128xbf16, #tpu.memory_space<vmem>>, vector<32x128xbf16>
    %cst_6 = arith.constant dense<0.000000e+00> : vector<64x128xf32>
    %8 = tpu.matmul %6, %7, %cst_6 {dimension_numbers = #tpu.dot_dimension_numbers<[1], [0], [0], [1], [0, 0, 1, 1], [], []>} : vector<64x32xbf16>, vector<32x128xbf16>, vector<64x128xf32> -> vector<64x128xf32>
    %cst_7 = arith.constant 0.000000e+00 : f32
    %9 = vector.broadcast %cst_7 : f32 to vector<82x128xf32>
    %c0_8 = arith.constant 0 : index
    %c0_9 = arith.constant 0 : index
    %10 = vector.load %arg9[%c0_8, %c0_9] : memref<82x128xf32, #tpu.memory_space<vmem>>, vector<82x128xf32>
    tpu.vector_store %arg9[%c0_8, %c0_9], %9 {strides = array<i32>} : memref<82x128xf32, #tpu.memory_space<vmem>>, vector<82x128xf32>,
    %cst_10 = arith.constant 0.000000e+00 : f32
    %11 = vector.broadcast %cst_10 : f32 to vector<82x128xf32>
    %c0_11 = arith.constant 0 : index
    %c0_12 = arith.constant 0 : index
    %12 = vector.load %arg10[%c0_11, %c0_12] : memref<82x128xf32, #tpu.memory_space<vmem>>, vector<82x128xf32>
    tpu.vector_store %arg10[%c0_11, %c0_12], %11 {strides = array<i32>} : memref<82x128xf32, #tpu.memory_space<vmem>>, vector<82x128xf32>,
    %c9 = arith.constant 9 : index
    %c0_13 = arith.constant 0 : index
    %13 = vector.load %arg9[%c9, %c0_13] : memref<82x128xf32, #tpu.memory_space<vmem>>, vector<64x128xf32>
    tpu.vector_store %arg9[%c9, %c0_13], %8 {strides = array<i32>} : memref<82x128xf32, #tpu.memory_space<vmem>>, vector<64x128xf32>,
    %c9_14 = arith.constant 9 : index
    %c0_15 = arith.constant 0 : index
    %14 = vector.load %arg10[%c9_14, %c0_15] : memref<82x128xf32, #tpu.memory_space<vmem>>, vector<64x128xf32>
    tpu.vector_store %arg10[%c9_14, %c0_15], %4 {strides = array<i32>} : memref<82x128xf32, #tpu.memory_space<vmem>>, vector<64x128xf32>,
    %15 = tpu.iota {dimensions = array<i32: 0>} : vector<64x1xi32>
    %c8_i32 = arith.constant 8 : i32
    %c0_i32 = arith.constant 0 : i32
    %16 = arith.cmpi eq, %c8_i32, %c0_i32 : i32
    %c1_i32 = arith.constant 1 : i32
    %17 = arith.select %16, %c1_i32, %c8_i32 : i32
    %18 = vector.broadcast %17 : i32 to vector<64x1xi32>
    %19 = arith.remsi %15, %18 : vector<64x1xi32>
    %c0_i32_16 = arith.constant 0 : i32
    %20 = vector.broadcast %c0_i32_16 : i32 to vector<64x1xi32>
    %21 = arith.cmpi ne, %19, %20 : vector<64x1xi32>
    %c0_i32_17 = arith.constant 0 : i32
    %22 = vector.broadcast %c0_i32_17 : i32 to vector<64x1xi32>
    %23 = arith.cmpi slt, %19, %22 : vector<64x1xi32>
    %c0_i32_18 = arith.constant 0 : i32
    %24 = arith.cmpi slt, %17, %c0_i32_18 : i32
    %25 = vector.broadcast %24 : i1 to vector<64x1xi1>
    %26 = vector.broadcast %25 : vector<64x1xi1> to vector<64x1xi1>
    %27 = arith.xori %23, %26 : vector<64x1xi1>
    %28 = arith.andi %27, %21 : vector<64x1xi1>
    %29 = vector.broadcast %17 : i32 to vector<64x1xi32>
    %30 = arith.addi %19, %29 : vector<64x1xi32>
    %31 = arith.select %28, %30, %19 : vector<64x1xi1>, vector<64x1xi32>
    %c-1_i32 = arith.constant -1 : i32
    %32 = vector.broadcast %c-1_i32 : i32 to vector<64x1xi32>
    %33 = arith.addi %31, %32 : vector<64x1xi32>
    %c0_i32_19 = arith.constant 0 : i32
    %34 = vector.broadcast %c0_i32_19 : i32 to vector<64x1xi32>
    %35 = arith.cmpi sge, %33, %34 : vector<64x1xi32>
    %c-1_i32_20 = arith.constant -1 : i32
    %36 = vector.broadcast %c-1_i32_20 : i32 to vector<64x1xi32>
    %37 = arith.addi %31, %36 : vector<64x1xi32>
    %c8_i32_21 = arith.constant 8 : i32
    %38 = vector.broadcast %c8_i32_21 : i32 to vector<64x1xi32>
    %39 = arith.cmpi slt, %37, %38 : vector<64x1xi32>
    %40 = arith.andi %35, %39 : vector<64x1xi1>
    %41 = arith.extui %40 : vector<64x1xi1> to vector<64x1xi32>
    %42 = arith.sitofp %41 : vector<64x1xi32> to vector<64x1xf32>
    %c1_i32_22 = arith.constant 1 : i32
    %43 = vector.broadcast %c1_i32_22 : i32 to vector<64x1xi32>
    %44 = arith.addi %31, %43 : vector<64x1xi32>
    %c0_i32_23 = arith.constant 0 : i32
    %45 = vector.broadcast %c0_i32_23 : i32 to vector<64x1xi32>
    %46 = arith.cmpi sge, %44, %45 : vector<64x1xi32>
    %c1_i32_24 = arith.constant 1 : i32
    %47 = vector.broadcast %c1_i32_24 : i32 to vector<64x1xi32>
    %48 = arith.addi %31, %47 : vector<64x1xi32>
    %c8_i32_25 = arith.constant 8 : i32
    %49 = vector.broadcast %c8_i32_25 : i32 to vector<64x1xi32>
    %50 = arith.cmpi slt, %48, %49 : vector<64x1xi32>
    %51 = arith.andi %46, %50 : vector<64x1xi1>
    %52 = arith.extui %51 : vector<64x1xi1> to vector<64x1xi32>
    %53 = arith.sitofp %52 : vector<64x1xi32> to vector<64x1xf32>
    %c0_26 = arith.constant 0 : index
    %c0_27 = arith.constant 0 : index
    %54 = vector.load %arg9[%c0_26, %c0_27] : memref<82x128xf32, #tpu.memory_space<vmem>>, vector<64x128xf32>
    %c1 = arith.constant 1 : index
    %c0_28 = arith.constant 0 : index
    %55 = vector.load %arg9[%c1, %c0_28] : memref<82x128xf32, #tpu.memory_space<vmem>>, vector<64x128xf32>
    %56 = arith.maximumf %54, %55 : vector<64x128xf32>
    %c2 = arith.constant 2 : index
    %c0_29 = arith.constant 0 : index
    %57 = vector.load %arg9[%c2, %c0_29] : memref<82x128xf32, #tpu.memory_space<vmem>>, vector<64x128xf32>
    %58 = arith.maximumf %56, %57 : vector<64x128xf32>
    %c8 = arith.constant 8 : index
    %c0_30 = arith.constant 0 : index
    %59 = vector.load %arg9[%c8, %c0_30] : memref<82x128xf32, #tpu.memory_space<vmem>>, vector<64x128xf32>
    %60 = arith.maximumf %58, %59 : vector<64x128xf32>
    %c9_31 = arith.constant 9 : index
    %c0_32 = arith.constant 0 : index
    %61 = vector.load %arg9[%c9_31, %c0_32] : memref<82x128xf32, #tpu.memory_space<vmem>>, vector<64x128xf32>
    %62 = arith.maximumf %60, %61 : vector<64x128xf32>
    %c10 = arith.constant 10 : index
    %c0_33 = arith.constant 0 : index
    %63 = vector.load %arg9[%c10, %c0_33] : memref<82x128xf32, #tpu.memory_space<vmem>>, vector<64x128xf32>
    %64 = arith.maximumf %62, %63 : vector<64x128xf32>
    %c16 = arith.constant 16 : index
    %c0_34 = arith.constant 0 : index
    %65 = vector.load %arg9[%c16, %c0_34] : memref<82x128xf32, #tpu.memory_space<vmem>>, vector<64x128xf32>
    %66 = arith.maximumf %64, %65 : vector<64x128xf32>
    %c17 = arith.constant 17 : index
    %c0_35 = arith.constant 0 : index
    %67 = vector.load %arg9[%c17, %c0_35] : memref<82x128xf32, #tpu.memory_space<vmem>>, vector<64x128xf32>
    %68 = arith.maximumf %66, %67 : vector<64x128xf32>
    %c18 = arith.constant 18 : index
    %c0_36 = arith.constant 0 : index
    %69 = vector.load %arg9[%c18, %c0_36] : memref<82x128xf32, #tpu.memory_space<vmem>>, vector<64x128xf32>
    %70 = arith.maximumf %68, %69 : vector<64x128xf32>
    %cst_37 = arith.constant 0.000000e+00 : f32
    %71 = vector.broadcast %cst_37 : f32 to vector<64x128xf32>
    %cst_38 = arith.constant 0.000000e+00 : f32
    %72 = vector.broadcast %cst_38 : f32 to vector<64x128xf32>
    %c0_39 = arith.constant 0 : index
    %c0_40 = arith.constant 0 : index
    %73 = vector.load %arg9[%c0_39, %c0_40] : memref<82x128xf32, #tpu.memory_space<vmem>>, vector<64x128xf32>
    %74 = vector.broadcast %42 : vector<64x1xf32> to vector<64x128xf32>
    %75 = arith.mulf %73, %74 : vector<64x128xf32>
    %76 = arith.subf %75, %70 : vector<64x128xf32>
    %77 = math.exp %76 : vector<64x128xf32>
    %78 = arith.addf %72, %77 : vector<64x128xf32>
    %c0_41 = arith.constant 0 : index
    %c0_42 = arith.constant 0 : index
    %79 = vector.load %arg10[%c0_41, %c0_42] : memref<82x128xf32, #tpu.memory_space<vmem>>, vector<64x128xf32>
    %80 = vector.broadcast %42 : vector<64x1xf32> to vector<64x128xf32>
    %81 = arith.mulf %79, %80 : vector<64x128xf32>
    %82 = arith.mulf %77, %81 : vector<64x128xf32>
    %83 = arith.addf %71, %82 : vector<64x128xf32>
    %c1_43 = arith.constant 1 : index
    %c0_44 = arith.constant 0 : index
    %84 = vector.load %arg9[%c1_43, %c0_44] : memref<82x128xf32, #tpu.memory_space<vmem>>, vector<64x128xf32>
    %85 = arith.subf %84, %70 : vector<64x128xf32>
    %86 = math.exp %85 : vector<64x128xf32>
    %87 = arith.addf %78, %86 : vector<64x128xf32>
    %c1_45 = arith.constant 1 : index
    %c0_46 = arith.constant 0 : index
    %88 = vector.load %arg10[%c1_45, %c0_46] : memref<82x128xf32, #tpu.memory_space<vmem>>, vector<64x128xf32>
    %89 = arith.mulf %86, %88 : vector<64x128xf32>
    %90 = arith.addf %83, %89 : vector<64x128xf32>
    %c2_47 = arith.constant 2 : index
    %c0_48 = arith.constant 0 : index
    %91 = vector.load %arg9[%c2_47, %c0_48] : memref<82x128xf32, #tpu.memory_space<vmem>>, vector<64x128xf32>
    %92 = vector.broadcast %53 : vector<64x1xf32> to vector<64x128xf32>
    %93 = arith.mulf %91, %92 : vector<64x128xf32>
    %94 = arith.subf %93, %70 : vector<64x128xf32>
    %95 = math.exp %94 : vector<64x128xf32>
    %96 = arith.addf %87, %95 : vector<64x128xf32>
    %c2_49 = arith.constant 2 : index
    %c0_50 = arith.constant 0 : index
    %97 = vector.load %arg10[%c2_49, %c0_50] : memref<82x128xf32, #tpu.memory_space<vmem>>, vector<64x128xf32>
    %98 = vector.broadcast %53 : vector<64x1xf32> to vector<64x128xf32>
    %99 = arith.mulf %97, %98 : vector<64x128xf32>
    %100 = arith.mulf %95, %99 : vector<64x128xf32>
    %101 = arith.addf %90, %100 : vector<64x128xf32>
    %c8_51 = arith.constant 8 : index
    %c0_52 = arith.constant 0 : index
    %102 = vector.load %arg9[%c8_51, %c0_52] : memref<82x128xf32, #tpu.memory_space<vmem>>, vector<64x128xf32>
    %103 = vector.broadcast %42 : vector<64x1xf32> to vector<64x128xf32>
    %104 = arith.mulf %102, %103 : vector<64x128xf32>
    %105 = arith.subf %104, %70 : vector<64x128xf32>
    %106 = math.exp %105 : vector<64x128xf32>
    %107 = arith.addf %96, %106 : vector<64x128xf32>
    %c8_53 = arith.constant 8 : index
    %c0_54 = arith.constant 0 : index
    %108 = vector.load %arg10[%c8_53, %c0_54] : memref<82x128xf32, #tpu.memory_space<vmem>>, vector<64x128xf32>
    %109 = vector.broadcast %42 : vector<64x1xf32> to vector<64x128xf32>
    %110 = arith.mulf %108, %109 : vector<64x128xf32>
    %111 = arith.mulf %106, %110 : vector<64x128xf32>
    %112 = arith.addf %101, %111 : vector<64x128xf32>
    %c9_55 = arith.constant 9 : index
    %c0_56 = arith.constant 0 : index
    %113 = vector.load %arg9[%c9_55, %c0_56] : memref<82x128xf32, #tpu.memory_space<vmem>>, vector<64x128xf32>
    %114 = arith.subf %113, %70 : vector<64x128xf32>
    %115 = math.exp %114 : vector<64x128xf32>
    %116 = arith.addf %107, %115 : vector<64x128xf32>
    %c9_57 = arith.constant 9 : index
    %c0_58 = arith.constant 0 : index
    %117 = vector.load %arg10[%c9_57, %c0_58] : memref<82x128xf32, #tpu.memory_space<vmem>>, vector<64x128xf32>
    %118 = arith.mulf %115, %117 : vector<64x128xf32>
    %119 = arith.addf %112, %118 : vector<64x128xf32>
    %c10_59 = arith.constant 10 : index
    %c0_60 = arith.constant 0 : index
    %120 = vector.load %arg9[%c10_59, %c0_60] : memref<82x128xf32, #tpu.memory_space<vmem>>, vector<64x128xf32>
    %121 = vector.broadcast %53 : vector<64x1xf32> to vector<64x128xf32>
    %122 = arith.mulf %120, %121 : vector<64x128xf32>
    %123 = arith.subf %122, %70 : vector<64x128xf32>
    %124 = math.exp %123 : vector<64x128xf32>
    %125 = arith.addf %116, %124 : vector<64x128xf32>
    %c10_61 = arith.constant 10 : index
    %c0_62 = arith.constant 0 : index
    %126 = vector.load %arg10[%c10_61, %c0_62] : memref<82x128xf32, #tpu.memory_space<vmem>>, vector<64x128xf32>
    %127 = vector.broadcast %53 : vector<64x1xf32> to vector<64x128xf32>
    %128 = arith.mulf %126, %127 : vector<64x128xf32>
    %129 = arith.mulf %124, %128 : vector<64x128xf32>
    %130 = arith.addf %119, %129 : vector<64x128xf32>
    %c16_63 = arith.constant 16 : index
    %c0_64 = arith.constant 0 : index
    %131 = vector.load %arg9[%c16_63, %c0_64] : memref<82x128xf32, #tpu.memory_space<vmem>>, vector<64x128xf32>
    %132 = vector.broadcast %42 : vector<64x1xf32> to vector<64x128xf32>
    %133 = arith.mulf %131, %132 : vector<64x128xf32>
    %134 = arith.subf %133, %70 : vector<64x128xf32>
    %135 = math.exp %134 : vector<64x128xf32>
    %136 = arith.addf %125, %135 : vector<64x128xf32>
    %c16_65 = arith.constant 16 : index
    %c0_66 = arith.constant 0 : index
    %137 = vector.load %arg10[%c16_65, %c0_66] : memref<82x128xf32, #tpu.memory_space<vmem>>, vector<64x128xf32>
    %138 = vector.broadcast %42 : vector<64x1xf32> to vector<64x128xf32>
    %139 = arith.mulf %137, %138 : vector<64x128xf32>
    %140 = arith.mulf %135, %139 : vector<64x128xf32>
    %141 = arith.addf %130, %140 : vector<64x128xf32>
    %c17_67 = arith.constant 17 : index
    %c0_68 = arith.constant 0 : index
    %142 = vector.load %arg9[%c17_67, %c0_68] : memref<82x128xf32, #tpu.memory_space<vmem>>, vector<64x128xf32>
    %143 = arith.subf %142, %70 : vector<64x128xf32>
    %144 = math.exp %143 : vector<64x128xf32>
    %145 = arith.addf %136, %144 : vector<64x128xf32>
    %c17_69 = arith.constant 17 : index
    %c0_70 = arith.constant 0 : index
    %146 = vector.load %arg10[%c17_69, %c0_70] : memref<82x128xf32, #tpu.memory_space<vmem>>, vector<64x128xf32>
    %147 = arith.mulf %144, %146 : vector<64x128xf32>
    %148 = arith.addf %141, %147 : vector<64x128xf32>
    %c18_71 = arith.constant 18 : index
    %c0_72 = arith.constant 0 : index
    %149 = vector.load %arg9[%c18_71, %c0_72] : memref<82x128xf32, #tpu.memory_space<vmem>>, vector<64x128xf32>
    %150 = vector.broadcast %53 : vector<64x1xf32> to vector<64x128xf32>
    %151 = arith.mulf %149, %150 : vector<64x128xf32>
    %152 = arith.subf %151, %70 : vector<64x128xf32>
    %153 = math.exp %152 : vector<64x128xf32>
    %154 = arith.addf %145, %153 : vector<64x128xf32>
    %c18_73 = arith.constant 18 : index
    %c0_74 = arith.constant 0 : index
    %155 = vector.load %arg10[%c18_73, %c0_74] : memref<82x128xf32, #tpu.memory_space<vmem>>, vector<64x128xf32>
    %156 = vector.broadcast %53 : vector<64x1xf32> to vector<64x128xf32>
    %157 = arith.mulf %155, %156 : vector<64x128xf32>
    %158 = arith.mulf %153, %157 : vector<64x128xf32>
    %159 = arith.addf %148, %158 : vector<64x128xf32>
    %160 = tpu.reciprocal %154 {approx = true} : vector<64x128xf32> -> vector<64x128xf32>
    %161 = arith.mulf %159, %160 : vector<64x128xf32>
    %162 = arith.truncf %161 : vector<64x128xf32> to vector<64x128xbf16>
    %c0_75 = arith.constant 0 : index
    %c0_76 = arith.constant 0 : index
    %163 = vector.load %arg4[%c0_75, %c0_76] : memref<128x64xbf16, #tpu.memory_space<vmem>>, vector<128x64xbf16>
    %cst_77 = arith.constant dense<0.000000e+00> : vector<64x64xf32>
    %164 = tpu.matmul %162, %163, %cst_77 {dimension_numbers = #tpu.dot_dimension_numbers<[1], [0], [0], [1], [0, 0, 1, 1], [], []>} : vector<64x128xbf16>, vector<128x64xbf16>, vector<64x64xf32> -> vector<64x64xf32>
    %c0_78 = arith.constant 0 : index
    %c0_79 = arith.constant 0 : index
    %165 = vector.load %arg5[%c0_78, %c0_79] : memref<1x64xf32, #tpu.memory_space<vmem>>, vector<1x64xf32>
    %166 = vector.broadcast %165 : vector<1x64xf32> to vector<64x64xf32>
    %167 = arith.addf %164, %166 : vector<64x64xf32>
    %168 = arith.truncf %167 : vector<64x64xf32> to vector<64x64xbf16>
    %c0_80 = arith.constant 0 : index
    %c0_81 = arith.constant 0 : index
    %169 = vector.load %arg6[%c0_80, %c0_81] : memref<64x32xbf16, #tpu.memory_space<vmem>>, vector<64x32xbf16>
    %cst_82 = arith.constant dense<0.000000e+00> : vector<64x32xf32>
    %170 = tpu.matmul %168, %169, %cst_82 {dimension_numbers = #tpu.dot_dimension_numbers<[1], [0], [0], [1], [0, 0, 1, 1], [], []>} : vector<64x64xbf16>, vector<64x32xbf16>, vector<64x32xf32> -> vector<64x32xf32>
    %c0_83 = arith.constant 0 : index
    %c0_84 = arith.constant 0 : index
    %171 = vector.load %arg7[%c0_83, %c0_84] : memref<1x32xf32, #tpu.memory_space<vmem>>, vector<1x32xf32>
    %172 = vector.broadcast %171 : vector<1x32xf32> to vector<64x32xf32>
    %173 = arith.addf %170, %172 : vector<64x32xf32>
    %c0_85 = arith.constant 0 : index
    %c0_86 = arith.constant 0 : index
    %c0_87 = arith.constant 0 : index
    %174 = vector.load %arg8[%c0_85, %c0_86, %c0_87] : memref<1x64x32xf32, #tpu.memory_space<vmem>>, vector<1x64x32xf32>
    %175 = vector.shape_cast %174 : vector<1x64x32xf32> to vector<64x32xf32>
    %176 = vector.shape_cast %173 : vector<64x32xf32> to vector<1x64x32xf32>
    tpu.vector_store %arg8[%c0_85, %c0_86, %c0_87], %176 {strides = array<i32>} : memref<1x64x32xf32, #tpu.memory_space<vmem>>, vector<1x64x32xf32>,
    return
  }
  func.func @transform_0(%arg0: i32) -> (i32, i32, i32) {
    %c0_i32 = arith.constant 0 : i32
    %c0_i32_0 = arith.constant 0 : i32
    %c0_i32_1 = arith.constant 0 : i32
    return %arg0, %c0_i32, %c0_i32_0 : i32, i32, i32
  }
  func.func @transform_1(%arg0: i32) -> (i32, i32) {
    %c0_i32 = arith.constant 0 : i32
    %c0_i32_0 = arith.constant 0 : i32
    %c0_i32_1 = arith.constant 0 : i32
    return %c0_i32, %c0_i32_0 : i32, i32
  }
  func.func @transform_2(%arg0: i32) -> (i32, i32) {
    %c0_i32 = arith.constant 0 : i32
    %c0_i32_0 = arith.constant 0 : i32
    %c0_i32_1 = arith.constant 0 : i32
    return %c0_i32, %c0_i32_0 : i32, i32
  }
  func.func @transform_3(%arg0: i32) -> (i32, i32) {
    %c0_i32 = arith.constant 0 : i32
    %c0_i32_0 = arith.constant 0 : i32
    %c0_i32_1 = arith.constant 0 : i32
    return %c0_i32, %c0_i32_0 : i32, i32
  }
  func.func @transform_4(%arg0: i32) -> (i32, i32) {
    %c0_i32 = arith.constant 0 : i32
    %c0_i32_0 = arith.constant 0 : i32
    %c0_i32_1 = arith.constant 0 : i32
    return %c0_i32, %c0_i32_0 : i32, i32
  }
  func.func @transform_5(%arg0: i32) -> (i32, i32) {
    %c0_i32 = arith.constant 0 : i32
    %c0_i32_0 = arith.constant 0 : i32
    %c0_i32_1 = arith.constant 0 : i32
    return %c0_i32, %c0_i32_0 : i32, i32
  }
  func.func @transform_6(%arg0: i32) -> (i32, i32) {
    %c0_i32 = arith.constant 0 : i32
    %c0_i32_0 = arith.constant 0 : i32
    %c0_i32_1 = arith.constant 0 : i32
    return %c0_i32, %c0_i32_0 : i32, i32
  }
  func.func @transform_7(%arg0: i32) -> (i32, i32, i32) {
    %c0_i32 = arith.constant 0 : i32
    %c0_i32_0 = arith.constant 0 : i32
    %c0_i32_1 = arith.constant 0 : i32
    return %arg0, %c0_i32, %c0_i32_0 : i32, i32, i32
  }
}

</mosaic_0001>

<bundles_post_ra>
// kernel: tpu_custom_call.1
= control target key start
LH: loop header
LB: loop body
LE: loop exit
PB: predicated region body
PF: predicated region fallthrough
CT: control target
= control target key end

     0   :  { %s2152_s24 = smov 0   ;;  %s2995_s0 = inlined_call_operand.vmem [shape: bf16[2,64,32], index: 0, kind: input, shape index: {}]   ;;  %s2996_s1 = inlined_call_operand.vmem [shape: bf16[32,160], index: 1, kind: input, shape index: {}]   ;;  %s2997_s2 = inlined_call_operand.vmem [shape: bf16[32,128], index: 2, kind: input, shape index: {}]   ;;  %s2998_s3 = inlined_call_operand.vmem [shape: bf16[128,64], index: 3, kind: input, shape index: {}]   ;;  %s2999_s4 = inlined_call_operand.vmem [shape: f32[1,64], index: 4, kind: input, shape index: {}]   ;;  %s3000_s5 = inlined_call_operand.vmem [shape: bf16[64,32], index: 5, kind: input, shape index: {}]   ;;  %s3001_s6 = inlined_call_operand.vmem [shape: f32[1,32], index: 6, kind: input, shape index: {}]   ;;  %s3002_s7 = inlined_call_operand.vmem [shape: f32[2,64,32], index: 7, kind: output, shape index: {}]  }
   0x1 LB: > { %s1760_s25 = sadd.s32 4294967295, %s2108_s24   ;;  %p1764_p0 = scmp.ge.s32.totalorder %s2108_s24, 1  ;;  %s2108_s24 = sphi %s2152_s24, %s17_s24  }
   0x2   : > { %p237_p1 = scmp.lt.s32.totalorder %s2108_s24, 3 }
   0x4   : > { %p238_p2 = pnand %p1764_p0, %p237_p1 }
   0x6   : > { %241 = sbr.rel (%p238_p2) target bundleno = 1003 (0x3eb), region = 48 }
   0xb   : > { %v1913_v0 = vld [vmem:[%s2996_s1 + $0x14] ss:$8 sps:$4 sm:$0xff]   ;;  %p269_p3 = scmp.lt.s32.totalorder %s1760_s25, 1  ;;  %v1915_v1 = vld [vmem:[%s2996_s1 + $0x10] ss:$8 sps:$4 sm:$0xff]   ;;  %v2110_v2 = vmov 0   ;;  %v553_v40 = vlaneseq }
   0xc   : > { %377 = vmatprep.mubr.bf16.mxu0 %v2110_v2  ;;  %357 = vmatprep.subr.bf16.mxu0 %v1913_v0  ;;  %v1916_v3 = vld [vmem:[%s2996_s1 + $0x4] ss:$8 sps:$4 sm:$0xff]   ;;  %v1918_v4 = vld [vmem:[%s2996_s1] ss:$8 sps:$4 sm:$0xff]   ;;  %vm332_vm0 = vcmask 261120   ;;  %v2111_v9 = vmov 0.0  }
   0xd   : > { %s3120_s25 = smov (!%p269_p3, %s1760_s25), 1  ;;  %358 = vmatpush1.bf16.msra.mxu0 %v1915_v1  ;;  %527 = vst [vmem:[#allocation3 + $0x8] sm:$0xff] %v2111_v9  ;;  %528 = vst [vmem:[#allocation3 + $0x10] sm:$0xff] %v2111_v9  ;;  %v1923_v10 = vld [vmem:[%s2997_s2 + $0x8] sm:$0xff]   ;;  %v1924_v11 = vld [vmem:[%s2997_s2] sm:$0xff]   ;;  %v554_v41 = vshrl.u32 %v553_v40, 7 }
   0xe   : > { %359 = vmatprep.subr.bf16.mxu0 %v1916_v3  ;;  %s1823_s11 = sshll.u32 %s3120_s25, 5  ;;  %515 = vst [vmem:[#allocation2] sm:$0xff] %v2111_v9  ;;  %516 = vst [vmem:[#allocation2 + $0x8] sm:$0xff] %v2111_v9  ;;  %1851 = vmatprep.subr.bf16.mxu1 %v1923_v10  ;;  %v1925_v32 = vld [vmem:[%s2998_s3 + $0x38] sm:$0xff]   ;;  %v1926_v33 = vld [vmem:[%s2998_s3 + $0x30] sm:$0xff]   ;;  %s1824_s26 = sshll.u32 %s3120_s25, 6 }
   0xf   : > { %s273_s14 = scalar_lea.vmem %s2995_s0, %s1823_s11  ;;  %517 = vst [vmem:[#allocation2 + $0x10] sm:$0xff] %v2111_v9  ;;  %518 = vst [vmem:[#allocation2 + $0x18] sm:$0xff] %v2111_v9  ;;  %1852 = vmatpush3.bf16.msra.mxu1 %v1923_v10  ;;  %v1927_v34 = vld [vmem:[%s2998_s3 + $0x28] sm:$0xff]   ;;  %v1928_v35 = vld [vmem:[%s2998_s3 + $0x20] sm:$0xff]   ;;  %v555_v42 = vadd.s32 8, %v554_v41  ;;  %v556_v43 = vadd.s32 16, %v554_v41  ;;  %s278_s8 = scalar_lea.vmem %s3002_s7, %s1824_s26 }
  0x10   : > { %v1919_v5 = vld [vmem:[%s273_s14] sm:$0xff]   ;;  %v1920_v6 = vld [vmem:[%s273_s14 + $0x8] sm:$0xff]   ;;  %v1921_v7 = vld [vmem:[%s273_s14 + $0x10] sm:$0xff]   ;;  %519 = vst [vmem:[#allocation2 + $0x20] sm:$0xff] %v2111_v9  ;;  %1853 = vmatprep.subr.bf16.mxu1 %v1924_v11  ;;  %v557_v44 = vadd.s32 24, %v554_v41  ;;  %v566_v45 = vand.u32 7, %v554_v41 }
  0x11   : > { %360 = vmatpush1.bf16.msra.mxu0 %v1918_v4  ;;  %v1922_v8 = vld [vmem:[%s273_s14 + $0x18] sm:$0xff]   ;;  %520 = vst [vmem:[#allocation2 + $0x28] sm:$0xff] %v2111_v9  ;;  %521 = vst [vmem:[#allocation2 + $0x30] sm:$0xff] %v2111_v9  ;;  %v1930_v37 = vld [vmem:[%s2998_s3 + $0x10] sm:$0xff]   ;;  %v573_v46 = vand.u32 7, %v555_v42  ;;  %v580_v47 = vand.u32 7, %v556_v43 }
  0x12   : > { %522 = vst [vmem:[#allocation2 + $0x38] sm:$0xff] %v2111_v9  ;;  %523 = vst [vmem:[#allocation2 + $0x40] sm:$0xff] %v2111_v9  ;;  %1863 = vmatprep.subr.bf16.mxu0 %v1925_v32  ;;  %v1929_v36 = vld [vmem:[%s2998_s3 + $0x18] sm:$0xff]   ;;  %v1931_v38 = vld [vmem:[%s2998_s3 + $0x8] sm:$0xff]   ;;  %v558_v48 = vadd.s32 32, %v554_v41  ;;  %v587_v49 = vand.u32 7, %v557_v44 }
  0x13   : > { %524 = vst [vmem:[#allocation2 + $0x48] sm:$0xff] %v2111_v9  ;;  %525 = vst [vmem:[#allocation2 + $0x50] sm:$0x3] %v2111_v9  ;;  %1854 = vmatpush3.bf16.msra.mxu1 %v1924_v11  ;;  %v1932_v39 = vld [vmem:[%s2998_s3] sm:$0xff]   ;;  %v559_v50 = vadd.s32 40, %v554_v41  ;;  %v560_v51 = vadd.s32 48, %v554_v41 }
  0x14   : > { %1777 = vmatmul.mubr.msk.bf16.vlgmr.msra.gmra.mxu0 %vm332_vm0, %v1919_v5  ;;  %526 = vst [vmem:[#allocation3] sm:$0xff] %v2111_v9  ;;  %529 = vst [vmem:[#allocation3 + $0x18] sm:$0xff] %v2111_v9  ;;  %v561_v52 = vadd.s32 56, %v554_v41  ;;  %v658_v53 = vadd.s32 4294967295, %v566_v45  ;;  %v659_v54 = vadd.s32 4294967295, %v573_v46  ;;  %v660_v55 = vadd.s32 4294967295, %v580_v47 }
  0x15   : > { %387 = vmatprep.mubr.bf16.mxu0 %v2110_v2  ;;  %530 = vst [vmem:[#allocation3 + $0x20] sm:$0xff] %v2111_v9  ;;  %531 = vst [vmem:[#allocation3 + $0x28] sm:$0xff] %v2111_v9  ;;  %1864 = vmatpush3.bf16.msra.mxu0 %v1925_v32  ;;  %v706_v56 = vadd.s32 1, %v566_v45  ;;  %v707_v57 = vadd.s32 1, %v573_v46  ;;  %v594_v58 = vand.u32 7, %v558_v48  ;;  %v661_v59 = vadd.s32 4294967295, %v587_v49 }
  0x16   : > { %532 = vst [vmem:[#allocation3 + $0x30] sm:$0xff] %v2111_v9  ;;  %533 = vst [vmem:[#allocation3 + $0x38] sm:$0xff] %v2111_v9  ;;  %1865 = vmatprep.subr.bf16.mxu0 %v1926_v33  ;;  %v601_v60 = vand.u32 7, %v559_v50  ;;  %v608_v61 = vand.u32 7, %v560_v51  ;;  %v615_v62 = vand.u32 7, %v561_v52  ;;  %vm666_vm1 = vcmp.ge.s32.totalorder %v658_v53, 0 }
  0x17   : > { %534 = vst [vmem:[#allocation3 + $0x40] sm:$0xff] %v2111_v9  ;;  %535 = vst [vmem:[#allocation3 + $0x48] sm:$0xff] %v2111_v9  ;;  %vm667_vm2 = vcmp.ge.s32.totalorder %v659_v54, 0  ;;  %vm668_vm3 = vcmp.ge.s32.totalorder %v660_v55, 0  ;;  %vm722_vm4 = vcmp.lt.s32.totalorder %v706_v56, 8  ;;  %v708_v63 = vadd.s32 1, %v580_v47 }
  0x18   : > { %536 = vst [vmem:[#allocation3 + $0x50] sm:$0x3] %v2111_v9  ;;  %v709_v0 = vadd.s32 1, %v587_v49  ;;  %vm723_vm5 = vcmp.lt.s32.totalorder %v707_v57, 8  ;;  %v662_v1 = vadd.s32 4294967295, %v594_v58  ;;  %vm669_vm6 = vcmp.ge.s32.totalorder %v661_v59, 0 }
  0x19   : > { %1866 = vmatpush3.bf16.msra.mxu0 %v1926_v33  ;;  %v663_v3 = vadd.s32 4294967295, %v601_v60  ;;  %v664_v4 = vadd.s32 4294967295, %v608_v61  ;;  %v710_v5 = vadd.s32 1, %v594_v58  ;;  %v713_v10 = vadd.s32 1, %v615_v62 }
  0x1a   : > { %1867 = vmatprep.subr.bf16.mxu0 %v1927_v34  ;;  %vm724_vm7 = vcmp.lt.s32.totalorder %v708_v63, 8  ;;  %vm725_vm8 = vcmp.lt.s32.totalorder %v709_v0, 8  ;;  %vm670_vm9 = vcmp.ge.s32.totalorder %v662_v1, 0 }
  0x1b   : > { %vm671_vm10 = vcmp.ge.s32.totalorder %v663_v3, 0  ;;  %vm672_vm11 = vcmp.ge.s32.totalorder %v664_v4, 0  ;;  %vm726_vm12 = vcmp.lt.s32.totalorder %v710_v5, 8 }
  0x1c   : > { %1778 = vmatmul.mubr.msk.bf16.gmra.mxu0 %vm332_vm0, %v1920_v6  ;;  %v665_v6 = vadd.s32 4294967295, %v615_v62  ;;  %v2300_v32 = vsel %vm671_vm10, 1.0, %v2111_v9  ;;  %v2304_v33 = vsel %vm672_vm11, 1.0, %v2111_v9 }
  0x1d   : > { %397 = vmatprep.mubr.bf16.mxu0 %v2110_v2  ;;  %1868 = vmatpush3.bf16.msra.mxu0 %v1927_v34  ;;  %3031 = vst [vmem:[#allocation7_spill] sm:$0xff] %v2300_v32  ;;  %3032 = vst [vmem:[#allocation8_spill] sm:$0xff] %v2304_v33  ;;  %v2308_v34 = vsel %vm726_vm12, 1.0, %v2111_v9 }
  0x1e   : > { %1869 = vmatprep.subr.bf16.mxu0 %v1928_v35  ;;  %vm673_vm13 = vcmp.ge.s32.totalorder %v665_v6, 0  ;;  %3033 = vst [vmem:[#allocation9_spill] sm:$0xff] %v2308_v34 }
  0x21   : > { %1870 = vmatpush3.bf16.msra.mxu0 %v1928_v35 }
  0x22   : > { %1871 = vmatprep.subr.bf16.mxu0 %v1929_v36 }
  0x24   : > { %1779 = vmatmul.mubr.msk.bf16.gmra.mxu0 %vm332_vm0, %v1921_v7  ;;  %v711_v7 = vadd.s32 1, %v601_v60 }
  0x25   : > { %407 = vmatprep.mubr.bf16.mxu0 %v2110_v2  ;;  %1872 = vmatpush3.bf16.msra.mxu0 %v1929_v36 }
  0x26   : > { %1873 = vmatprep.subr.bf16.mxu0 %v1930_v37  ;;  %vm727_vm14 = vcmp.lt.s32.totalorder %v711_v7, 8 }
  0x29   : > { %1874 = vmatpush3.bf16.msra.mxu0 %v1930_v37  ;;  %v2312_v37 = vsel %vm673_vm13, 1.0, %v2111_v9 }
  0x2a   : > { %1875 = vmatprep.subr.bf16.mxu0 %v1931_v38  ;;  %3034 = vst [vmem:[#allocation10_spill] sm:$0xff] %v2312_v37 }
  0x2c   : > { %1780 = vmatmul.mubr.msk.bf16.gmra.mxu0 %vm332_vm0, %v1922_v8  ;;  %v712_v8 = vadd.s32 1, %v608_v61 }
  0x2d   : > { %1876 = vmatpush3.bf16.msra.mxu0 %v1931_v38  ;;  %v2316_v38 = vsel %vm727_vm14, 1.0, %v2111_v9 }
  0x2e   : > { %1877 = vmatprep.subr.bf16.mxu0 %v1932_v39  ;;  %vm728_vm15 = vcmp.lt.s32.totalorder %v712_v8, 8  ;;  %3035 = vst [vmem:[#allocation11_spill] sm:$0xff] %v2316_v38 }
  0x31   : > { %1878 = vmatpush3.bf16.msra.mxu0 %v1932_v39  ;;  %v2320_v39 = vsel %vm728_vm15, 1.0, %v2111_v9 }
  0x32   : > { %3036 = vst [vmem:[#allocation12_spill] sm:$0xff] %v2320_v39 }
  0xd4   : > { %v2210_v12 = vpop.f32.mrf.mxu0 }
  0xd5   : > { %545 = vst [vmem:[#allocation3 + $0x9] sm:$0xff] %v2210_v12 }
  0xd6   : > { %v381_v13 = vpop.f32.mrf.mxu0 }
  0xd8   : > { %v2213_v14 = vpop.f32.mrf.mxu0 }
  0xd9   : > { %546 = vst [vmem:[#allocation3 + $0x11] sm:$0xff] %v2213_v14 }
  0xda   : > { %v385_v15 = vpop.f32.mrf.mxu0 }
  0xdb   : > { %v418_v16 = vpack.c.bf16 %v385_v15, %v381_v13  ;;  %v2254_v13 = vsel %vm666_vm1, 1.0, %v2111_v9  ;;  %v2258_v15 = vsel %vm667_vm2, 1.0, %v2111_v9  ;;  %vm729_vm1 = vcmp.lt.s32.totalorder %v713_v10, 8 }
  0xdc   : > { %v2216_v17 = vpop.f32.mrf.mxu0  ;;  %v2324_v40 = vsel %vm729_vm1, 1.0, %v2111_v9  ;;  %vm1619_vm2 = vcmask 523264  }
  0xdd   : > { %547 = vst [vmem:[#allocation3 + $0x19] sm:$0xff] %v2216_v17  ;;  %1855 = vmatprep.mubr.msk.bf16.mxu1 %vm332_vm0, %v418_v16  ;;  %v2262_v16 = vsel %vm668_vm3, 1.0, %v2111_v9  ;;  %3037 = vst [vmem:[#allocation13_spill] sm:$0xff] %v2324_v40 }
  0xde   : > { %v391_v18 = vpop.f32.mrf.mxu0 }
  0xe0   : > { %v393_v19 = vpop.f32.mrf.mxu0 }
  0xe1   : > { %548 = vst [vmem:[#allocation3 + $0x21] sm:$0xff] %v393_v19  ;;  %v2271_v19 = vsel %vm723_vm5, 1.0, %v2111_v9 }
  0xe2   : > { %v395_v20 = vpop.f32.mrf.mxu0 }
  0xe3   : > { %v419_v21 = vpack.c.bf16 %v395_v20, %v391_v18  ;;  %v2266_v18 = vsel %vm722_vm4, 1.0, %v2111_v9 }
  0xe4   : > { %v399_v22 = vpop.f32.mrf.mxu0  ;;  %v898_v35 = vld [vmem:[#allocation3 + $0x18] sm:$0xff] }
  0xe5   : > { %549 = vst [vmem:[#allocation3 + $0x29] sm:$0xff] %v399_v22  ;;  %1856 = vmatmul.mubr.msk.bf16.vlgmr.msra.gmra.mxu1 %vm332_vm0, %v419_v21  ;;  %v2277_v21 = vsel %vm669_vm6, 1.0, %v2111_v9  ;;  %v2279_v22 = vld [vmem:[#allocation2 + $0x1] sm:$0xff]  ;;  %v1025_v36 = vld [vmem:[#allocation3 + $0x12] sm:$0xff]  ;;  %v2362_v55 = vmul.f32 %v2262_v16, %v898_v35  ;;  %v2371_v59 = vmul.f32 %v2258_v15, %v898_v35 }
  0xe6   : > { %v401_v23 = vpop.f32.mrf.mxu0  ;;  %v2356_v53 = vmul.f32 %v2277_v21, %v898_v35  ;;  %v2368_v58 = vmul.f32 %v2271_v19, %v1025_v36  ;;  %v2374_v60 = vmul.f32 %v2266_v18, %v1025_v36 }
  0xe7   : > { %3042 = vst [vmem:[#allocation18_spill] sm:$0xff] %v2362_v55  ;;  %3045 = vst [vmem:[#allocation21_spill] sm:$0xff] %v2371_v59 }
  0xe8   : > { %v403_v24 = vpop.f32.mrf.mxu0  ;;  %v1026_v43 = vld [vmem:[#allocation3 + $0x1a] sm:$0xff]  ;;  %3044 = vst [vmem:[#allocation20_spill] sm:$0xff] %v2368_v58  ;;  %3046 = vst [vmem:[#allocation22_spill] sm:$0xff] %v2374_v60 }
  0xe9   : > { %550 = vst [vmem:[#allocation3 + $0x31] sm:$0xff] %v403_v24  ;;  %v2286_v24 = vsel %vm724_vm7, 1.0, %v2111_v9  ;;  %v899_v48 = vld [vmem:[#allocation3 + $0x20] sm:$0xff]  ;;  %v2392_v6 = vmul.f32 %v2271_v19, %v1026_v43 }
  0xea   : > { %v405_v25 = vpop.f32.mrf.mxu0  ;;  %3028 = vst [vmem:[#allocation4_spill] sm:$0xff] %v2286_v24  ;;  %v2359_v54 = vmul.f32 %v2286_v24, %v1025_v36  ;;  %v2380_v63 = vmul.f32 %v2277_v21, %v899_v48  ;;  %v2383_v0 = vmul.f32 %v2286_v24, %v1026_v43  ;;  %v2398_v8 = vmul.f32 %v2262_v16, %v899_v48 }
  0xeb   : > { %v420_v26 = vpack.c.bf16 %v405_v25, %v401_v23  ;;  %v2290_v25 = vsel %vm725_vm8, 1.0, %v2111_v9  ;;  %3049 = vst [vmem:[#allocation25_spill] sm:$0xff] %v2392_v6 }
  0xec   : > { %v409_v27 = vpop.f32.mrf.mxu0  ;;  %3029 = vst [vmem:[#allocation5_spill] sm:$0xff] %v2290_v25  ;;  %3041 = vst [vmem:[#allocation17_spill] sm:$0xff] %v2359_v54  ;;  %v1027_v56 = vld [vmem:[#allocation3 + $0x22] sm:$0xff]  ;;  %v2365_v57 = vmul.f32 %v2290_v25, %v1026_v43 }
  0xed   : > { %551 = vst [vmem:[#allocation3 + $0x39] sm:$0xff] %v409_v27  ;;  %1859 = vmatprep.mubr.msk.bf16.mxu1 %vm332_vm0, %v420_v26  ;;  %v896_v26 = vld [vmem:[#allocation3 + $0x8] sm:$0xff]  ;;  %v897_v27 = vld [vmem:[#allocation3 + $0x10] sm:$0xff]  ;;  %3047 = vst [vmem:[#allocation23_spill] sm:$0xff] %v2380_v63  ;;  %v2395_v7 = vmul.f32 %v2290_v25, %v1027_v56  ;;  %v2419_v40 = vmul.f32 %v2286_v24, %v1027_v56 }
  0xee   : > { %v411_v28 = vpop.f32.mrf.mxu0  ;;  %v2327_v41 = vmul.f32 %v2258_v15, %v896_v26  ;;  %v2330_v42 = vmul.f32 %v2262_v16, %v897_v27  ;;  %v2336_v45 = vmul.f32 %v2254_v13, %v896_v26  ;;  %v2346_v49 = vmul.f32 %v2258_v15, %v897_v27  ;;  %3043 = vst [vmem:[#allocation19_spill] sm:$0xff] %v2365_v57  ;;  %v900_v1 = vld [vmem:[#allocation3 + $0x28] sm:$0xff] }
  0xef   : > { %v2352_v51 = vmul.f32 %v2254_v13, %v897_v27  ;;  %3048 = vst [vmem:[#allocation24_spill] sm:$0xff] %v2383_v0  ;;  %3050 = vst [vmem:[#allocation26_spill] sm:$0xff] %v2395_v7 }
  0xf0   : > { %v413_v29 = vpop.f32.mrf.mxu0  ;;  %3038 = vst [vmem:[#allocation14_spill] sm:$0xff] %v2346_v49  ;;  %3051 = vst [vmem:[#allocation27_spill] sm:$0xff] %v2398_v8  ;;  %v901_v35 = vld [vmem:[#allocation3 + $0x30] sm:$0xff] }
  0xf1   : > { %552 = vst [vmem:[#allocation3 + $0x41] sm:$0xff] %v413_v29  ;;  %v2294_v29 = vsel %vm670_vm9, 1.0, %v2111_v9  ;;  %3040 = vst [vmem:[#allocation16_spill] sm:$0xff] %v2352_v51 }
  0xf2   : > { %v415_v30 = vpop.f32.mrf.mxu0  ;;  %3030 = vst [vmem:[#allocation6_spill] sm:$0xff] %v2294_v29  ;;  %v2401_v10 = vmul.f32 %v2294_v29, %v899_v48  ;;  %v2416_v48 = vmul.f32 %v2277_v21, %v900_v1  ;;  %3054 = vst [vmem:[#allocation30_spill] sm:$0xff] %v2419_v40 }
  0xf3   : > { %v421_v31 = vpack.c.bf16 %v415_v30, %v411_v28  ;;  %v1023_v28 = vld [vmem:[#allocation3 + $0x2] sm:$0xff]  ;;  %v770_v30 = vmax.f32 %v2279_v22, 0.0 }
  0xf4   : > { %v2333_v44 = vmul.f32 %v2266_v18, %v1023_v28  ;;  %3052 = vst [vmem:[#allocation28_spill] sm:$0xff] %v2401_v10  ;;  %3053 = vst [vmem:[#allocation29_spill] sm:$0xff] %v2416_v48  ;;  %v2422_v10 = vmul.f32 %v2300_v32, %v900_v1  ;;  %v2432_v48 = vld [vmem:[#allocation3 + $0x38] sm:$0xff] }
  0xf5   : > { %1860 = vmatmul.mubr.msk.bf16.gmra.mxu1 %vm332_vm0, %v421_v31  ;;  %v1024_v31 = vld [vmem:[#allocation3 + $0xa] sm:$0xff]  ;;  %3057 = vst [vmem:[#allocation33_spill] sm:$0xff] %v2432_v48 }
  0xf6   : > { %v2343_v9 = vmul.f32 %v2271_v19, %v1024_v31  ;;  %v2349_v50 = vmul.f32 %v2266_v18, %v1024_v31  ;;  %v1391_v31 = vld [vmem:[#allocation3 + $0x2a] sm:$0xff]  ;;  %3055 = vst [vmem:[#allocation31_spill] sm:$0xff] %v2422_v10  ;;  %v1029_v10 = vld [vmem:[#allocation3 + $0x32] sm:$0xff] }
  0xf7   : > { %v2437_v40 = vmul.f32 %v2290_v25, %v1391_v31 }
  0xf8   : > { %3039 = vst [vmem:[#allocation15_spill] sm:$0xff] %v2349_v50 }
  0xf9   : > { %3058 = vst [vmem:[#allocation34_spill] sm:$0xff] %v2437_v40  ;;  %v2453_v40 = vmul.f32 %v2300_v32, %v901_v35 }
  0xfb   : > { %3062 = vst [vmem:[#allocation38_spill] sm:$0xff] %v2453_v40 }
 0x1a5   : > { %v2247_v2 = vpop.f32.mrf.mxu1 }
 0x1a6   : > { %539 = vst [vmem:[#allocation2 + $0x19] sm:$0xff] %v2247_v2 }
 0x1a7   : > { %v2250_v11 = vpop.f32.mrf.mxu1 }
 0x1a8   : > { %537 = vst [vmem:[#allocation2 + $0x9] sm:$0xff] %v2250_v11 }
 0x1a9   : > { %v2273_v20 = vpop.f32.mrf.mxu1 }
 0x1aa   : > { %540 = vst [vmem:[#allocation2 + $0x21] sm:$0xff] %v2273_v20 }
 0x1ab   : > { %v2282_v23 = vpop.f32.mrf.mxu1 }
 0x1ac   : > { %538 = vst [vmem:[#allocation2 + $0x11] sm:$0xff] %v2282_v23 }
 0x1af   : > { %v2338_v46 = vld [vmem:[#allocation2 + $0x8] sm:$0xff] }
 0x1b0   : > { %v2340_v47 = vld [vmem:[#allocation2 + $0x2] sm:$0xff]  ;;  %v771_v61 = vmax.f32 %v2338_v46, %v2250_v11 }
 0x1b1   : > { %v786_v52 = vmax.f32 %v770_v30, %v2340_v47  ;;  %v2409_v36 = vld [vmem:[#allocation2 + $0x1a] sm:$0xff] }
 0x1b2   : > { %v2455_v60 = vld [vmem:[#allocation2 + $0x20] sm:$0xff] }
 0x1b3   : > { %v795_v62 = vmax.f32 %v786_v52, %v2338_v46  ;;  %v2385_v3 = vld [vmem:[#allocation2 + $0x10] sm:$0xff]  ;;  %v2387_v4 = vld [vmem:[#allocation2 + $0x18] sm:$0xff] }
 0x1b4   : > { %v2389_v5 = vld [vmem:[#allocation2 + $0xa] sm:$0xff]  ;;  %v772_v26 = vmax.f32 %v2385_v3, %v2282_v23  ;;  %v773_v27 = vmax.f32 %v2387_v4, %v2247_v2  ;;  %v2411_v43 = vld [vmem:[#allocation2 + $0x12] sm:$0xff]  ;;  %v1056_v51 = vmul.f32 %v2258_v15, %v2385_v3  ;;  %v2559_v58 = vmul.f32 %v2262_v16, %v2387_v4 }
 0x1b5   : > { %v787_v28 = vmax.f32 %v771_v61, %v2389_v5  ;;  %v804_v30 = vmax.f32 %v795_v62, %v2250_v11  ;;  %v2413_v52 = vpop.f32.mrf.mxu1  ;;  %v2425_v61 = vmul.f32 %v2308_v34, %v1027_v56  ;;  %v2440_v56 = vmul.f32 %v2304_v33, %v901_v35 }
 0x1b6   : > { %v788_v62 = vmax.f32 %v772_v26, %v2411_v43  ;;  %543 = vst [vmem:[#allocation2 + $0x39] sm:$0xff] %v2413_v52  ;;  %v789_v8 = vmax.f32 %v773_v27, %v2409_v36  ;;  %v2443_v26 = vmul.f32 %v2316_v38, %v1391_v31 }
 0x1b7   : > { %3056 = vst [vmem:[#allocation32_spill] sm:$0xff] %v2425_v61  ;;  %v796_v7 = vmax.f32 %v787_v28, %v2385_v3  ;;  %v813_v0 = vmax.f32 %v804_v30, %v2389_v5  ;;  %v2434_v6 = vpop.f32.mrf.mxu1  ;;  %3059 = vst [vmem:[#allocation35_spill] sm:$0xff] %v2440_v56  ;;  %v2446_v61 = vmul.f32 %v2294_v29, %v900_v1 }
 0x1b8   : > { %3060 = vst [vmem:[#allocation36_spill] sm:$0xff] %v2443_v26  ;;  %v797_v27 = vmax.f32 %v788_v62, %v2387_v4  ;;  %541 = vst [vmem:[#allocation2 + $0x29] sm:$0xff] %v2434_v6  ;;  %v2460_v26 = vmul.f32 0.0, %v2254_v13  ;;  %v2464_v1 = vmul.f32 %v2312_v37, %v2432_v48  ;;  %v2467_v62 = vmul.f32 %v2308_v34, %v1391_v31 }
 0x1b9   : > { %3061 = vst [vmem:[#allocation37_spill] sm:$0xff] %v2446_v61  ;;  %v805_v28 = vmax.f32 %v796_v7, %v2282_v23  ;;  %v822_v30 = vmax.f32 %v813_v0, %v2385_v3  ;;  %v2457_v56 = vpop.f32.mrf.mxu1  ;;  %v2470_v0 = vmul.f32 %v2294_v29, %v901_v35  ;;  %v798_v40 = vmax.f32 %v789_v8, %v2455_v60 }
 0x1ba   : > { %3063 = vst [vmem:[#allocation39_spill] sm:$0xff] %v2464_v1  ;;  %3064 = vst [vmem:[#allocation40_spill] sm:$0xff] %v2467_v62  ;;  %v806_v7 = vmax.f32 %v797_v27, %v2247_v2  ;;  %v856_v1 = vmul.f32 %v2258_v15, %v2338_v46  ;;  %v2483_v31 = vmul.f32 %v2266_v18, %v2340_v47 }
 0x1bb   : > { %3065 = vst [vmem:[#allocation41_spill] sm:$0xff] %v2470_v0  ;;  %544 = vst [vmem:[#allocation2 + $0x41] sm:$0xff] %v2457_v56  ;;  %v814_v61 = vmax.f32 %v805_v28, %v2411_v43  ;;  %v831_v32 = vmax.f32 %v822_v30, %v2282_v23  ;;  %v2477_v33 = vpop.f32.mrf.mxu1  ;;  %v2486_v35 = vmul.f32 %v2320_v39, %v1029_v10 }
 0x1bc   : > { %3066 = vst [vmem:[#allocation42_spill] sm:$0xff] %v2477_v33  ;;  %v2489_v8 = vmul.f32 %v2316_v38, %v1029_v10  ;;  %v815_v27 = vmax.f32 %v806_v7, %v2409_v36  ;;  %542 = vst [vmem:[#allocation2 + $0x31] sm:$0xff] %v2477_v33  ;;  %v2499_v0 = vmul.f32 %v2254_v13, %v2338_v46 }
 0x1bd   : > { %3067 = vst [vmem:[#allocation43_spill] sm:$0xff] %v2486_v35  ;;  %v823_v28 = vmax.f32 %v814_v61, %v2387_v4  ;;  %v2495_v30 = vmax.f32 %v831_v32, %v2411_v43  ;;  %v2505_v10 = vmul.f32 %v2290_v25, %v2409_v36  ;;  %v2509_v7 = vmul.f32 %v2277_v21, %v2455_v60 }
 0x1be   : > { %3068 = vst [vmem:[#allocation44_spill] sm:$0xff] %v2489_v8  ;;  %v2513_v61 = vmul.f32 %v2286_v24, %v2409_v36  ;;  %v807_v32 = vmax.f32 %v798_v40, %v2273_v20  ;;  %v824_v46 = vmax.f32 %v815_v27, %v2455_v60  ;;  %v2526_v39 = vmul.f32 %v2262_v16, %v2455_v60 }
 0x1bf   : > { %v832_v35 = vmax.f32 %v823_v28, %v2247_v2  ;;  %v863_v47 = vsub.f32 %v2460_v26, %v2495_v30  ;;  %v2520_v8 = vld [vmem:[#allocation2 + $0x22] sm:$0xff]  ;;  %v927_v62 = vsub.f32 %v2279_v22, %v2495_v30  ;;  %v2530_v48 = vmul.f32 %v2271_v19, %v2409_v36 }
 0x1c0   : > { %3069 = vst [vmem:[#allocation45_spill] sm:$0xff] %v2526_v39  ;;  %v2534_v40 = vmul.f32 %v2294_v29, %v2455_v60  ;;  %v816_v27 = vmax.f32 %v807_v32, %v2520_v8  ;;  %v833_v28 = vmax.f32 %v824_v46, %v2273_v20  ;;  %v857_v38 = vmul.f32 %v2262_v16, %v2385_v3  ;;  %v2542_v34 = vld [vmem:[#allocation2 + $0x28] sm:$0xff] }
 0x1c1   : > { %v858_v22 = vmul.f32 %v2277_v21, %v2387_v4  ;;  %v2545_v37 = vmax.f32 %v832_v35, %v2409_v36  ;;  %v871_v59 = vmul.f32 1.442695, %v863_v47  ;;  %v984_v29 = vmul.f32 %v2271_v19, %v2389_v5 }
 0x1c2   : > { %3070 = vst [vmem:[#allocation46_spill] sm:$0xff] %v2534_v40  ;;  %v985_v32 = vmul.f32 %v2286_v24, %v2411_v43  ;;  %v2552_v46 = vmax.f32 %v833_v28, %v2520_v8  ;;  %v825_v40 = vmax.f32 %v816_v27, %v2542_v34  ;;  %v935_v28 = vmul.f32 1.442695, %v927_v62 }
 0x1c3   : > { %v2561_v36 = vld [vmem:[#allocation2 + $0x30] sm:$0xff]  ;;  %v2563_v35 = vld [vmem:[#allocation2 + $0x38] sm:$0xff]  ;;  %v864_v47 = vsub.f32 %v856_v1, %v2545_v37  ;;  %v928_v24 = vsub.f32 %v2250_v11, %v2545_v37  ;;  %v2570_v27 = vmul.f32 %v2266_v18, %v2389_v5  ;;  %v991_v55 = vsub.f32 %v2483_v31, %v2495_v30 }
 0x1c4   : > { %3071 = vst [vmem:[#allocation47_spill] sm:$0xff] %v2561_v36  ;;  %v776_v63 = vmax.f32 %v2561_v36, %v2477_v33  ;;  %v777_v16 = vmax.f32 %v2563_v35, %v2413_v52  ;;  %v834_v50 = vmax.f32 %v825_v40, %v2434_v6  ;;  %v2579_v1 = vld [vmem:[#allocation2 + $0x3a] sm:$0xff]  ;;  %v2581_v39 = vld [vmem:[#allocation2 + $0x2a] sm:$0xff]  ;;  %v2583_v62 = vld [vmem:[#allocation2 + $0x32] sm:$0xff]  ;;  %v865_v5 = vsub.f32 %v857_v38, %v2552_v46 }
 0x1c5   : > { %3072 = vst [vmem:[#allocation48_spill] sm:$0xff] %v2583_v62  ;;  %1937 = vpow2.f32 %v871_v59  ;;  %v873_v57 = vmul.f32 1.442695, %v864_v47  ;;  %v929_v33 = vsub.f32 %v2282_v23, %v2552_v46  ;;  %v937_v31 = vmul.f32 1.442695, %v928_v24  ;;  %v2598_v59 = vld [vmem:[#allocation2 + $0x40] sm:$0xff] }
 0x1c6   : > { %v792_v36 = vmax.f32 %v776_v63, %v2583_v62  ;;  %v793_v40 = vmax.f32 %v777_v16, %v2579_v1  ;;  %v2591_v54 = vmax.f32 %v834_v50, %v2581_v39  ;;  %v875_v49 = vmul.f32 1.442695, %v865_v5 }
 0x1c7   : > { %1939 = vpow2.f32 %v935_v28  ;;  %v992_v25 = vsub.f32 %v984_v29, %v2545_v37  ;;  %v2596_v38 = vmul.f32 %v2271_v19, %v2411_v43  ;;  %v939_v50 = vmul.f32 1.442695, %v929_v33 }
 0x1c8   : > { %v801_v47 = vmax.f32 %v792_v36, %v2563_v35  ;;  %v866_v63 = vsub.f32 %v858_v22, %v2591_v54  ;;  %v930_v16 = vsub.f32 %v2247_v2, %v2591_v54  ;;  %v802_v24 = vmax.f32 %v793_v40, %v2598_v59  ;;  %v2633_v40 = vld [vmem:[#allocation2 + $0x42] sm:$0xff] }
 0x1c9   : > { %1941 = vpow2.f32 %v873_v57  ;;  %v993_v28 = vsub.f32 %v985_v32, %v2552_v46  ;;  %v2608_v29 = vmul.f32 %v2254_v13, %v2385_v3  ;;  %v999_v5 = vmul.f32 1.442695, %v991_v55 }
 0x1ca   : > { %v877_v19 = vmul.f32 1.442695, %v866_v63  ;;  %1943 = vpow2.f32 %v937_v31  ;;  %v1063_v36 = vsub.f32 %v2499_v0, %v2495_v30  ;;  %v1001_v22 = vmul.f32 1.442695, %v992_v25 }
 0x1cb   : > { %1945 = vpow2.f32 %v875_v49  ;;  %v1064_v62 = vsub.f32 %v1056_v51, %v2545_v37  ;;  %v2615_v33 = vmul.f32 %v2258_v15, %v2387_v4  ;;  %v810_v57 = vmax.f32 %v801_v47, %v2413_v52 }
 0x1cc   : > { %1947 = vpow2.f32 %v939_v50  ;;  %v941_v32 = vmul.f32 1.442695, %v930_v16  ;;  %v994_v13 = vsub.f32 %v2505_v10, %v2591_v54  ;;  %v811_v55 = vmax.f32 %v802_v24, %v2457_v56 }
 0x1cd   : > { %1949 = vpow2.f32 %v877_v19  ;;  %v1003_v3 = vmul.f32 1.442695, %v993_v28  ;;  %v1065_v25 = vsub.f32 %v2559_v58, %v2552_v46  ;;  %v1071_v49 = vmul.f32 1.442695, %v1063_v36  ;;  %v2655_v19 = vld [vmem:[#allocation2 + $0x48] sm:$0xff] }
 0x1ce   : > { %1951 = vpow2.f32 %v999_v5  ;;  %v1120_v15 = vsub.f32 %v2250_v11, %v2495_v30  ;;  %v2627_v51 = vmul.f32 %v2266_v18, %v2411_v43  ;;  %v1073_v4 = vmul.f32 1.442695, %v1064_v62 }
 0x1cf   : > { %1953 = vpow2.f32 %v1001_v22  ;;  %v1121_v0 = vsub.f32 %v2282_v23, %v2545_v37  ;;  %v1177_v10 = vsub.f32 %v2570_v27, %v2495_v30  ;;  %v819_v58 = vmax.f32 %v810_v57, %v2579_v1  ;;  %v959_v57 = vld [vmem:[#allocation3 + $0x1] sm:$0xff] }
 0x1d0   : > { %1955 = vpow2.f32 %v941_v32  ;;  %v1005_v31 = vmul.f32 1.442695, %v994_v13  ;;  %v1066_v11 = vsub.f32 %v2509_v7, %v2591_v54  ;;  %v3073_v18 = vmax.f32 %v2455_v60, %v2273_v20  ;;  %v1933_v13 = vld [vmem:[%s3000_s5 + $0x18] sm:$0xff]  }
 0x1d1   : > { %v820_v62 = vmax.f32 %v811_v55, %v2633_v40  ;;  %1957 = vpow2.f32 %v1003_v3  ;;  %v1075_v47 = vmul.f32 1.442695, %v1065_v25  ;;  %v775_v63 = vmax.f32 %v2542_v34, %v2434_v6  ;;  %1887 = vmatprep.subr.bf16.mxu1 %v1933_v13 }
 0x1d2   : > { %v2642_v43 = vmax.f32 %v3073_v18, %v2520_v8  ;;  %v1938_v27 = vpop.eup %1937  ;;  %1959 = vpow2.f32 %v1071_v49  ;;  %v1128_v16 = vmul.f32 1.442695, %v1120_v15  ;;  %v1178_v50 = vsub.f32 %v2596_v38, %v2545_v37  ;;  %1888 = vmatpush3.bf16.msra.mxu1 %v1933_v13 }
 0x1d3   : > { %1961 = vpow2.f32 %v1073_v4  ;;  %v1122_v7 = vsub.f32 %v2247_v2, %v2552_v46  ;;  %v1130_v60 = vmul.f32 1.442695, %v1121_v0  ;;  %v2653_v24 = vmul.f32 %v2277_v21, %v2542_v34 }
 0x1d4   : > { %v1940_v28 = vpop.eup %1939  ;;  %v2658_v5 = vmax.f32 %v819_v58, %v2598_v59  ;;  %1963 = vpow2.f32 %v1005_v31  ;;  %v1077_v36 = vmul.f32 1.442695, %v1066_v11  ;;  %v1242_v38 = vsub.f32 %v2608_v29, %v2495_v30 }
 0x1d5   : > { %v2663_v22 = vmax.f32 %v820_v62, %v2655_v19  ;;  %1965 = vpow2.f32 %v1075_v47  ;;  %v1185_v32 = vmul.f32 1.442695, %v1177_v10  ;;  %v1243_v21 = vsub.f32 %v2615_v33, %v2545_v37  ;;  %v2679_v47 = vld [vmem:[#allocation2 + $0x49] sm:$0xff] }
 0x1d6   : > { %v1942_v55 = vpop.eup %1941  ;;  %v911_v3 = vmul.f32 %v1938_v27, %v2460_v26  ;;  %1967 = vpow2.f32 %v1128_v16  ;;  %v1187_v25 = vmul.f32 1.442695, %v1178_v50  ;;  %v1299_v29 = vsub.f32 %v2282_v23, %v2495_v30 }
 0x1d7   : > { %v1944_v49 = vpop.eup %1943  ;;  %v951_v15 = vadd.f32 %v1940_v28, %v1938_v27  ;;  %1969 = vpow2.f32 %v1130_v60  ;;  %v1132_v4 = vmul.f32 1.442695, %v1122_v7  ;;  %v1300_v0 = vsub.f32 %v2247_v2, %v2545_v37 }
 0x1d8   : > { %v1946_v33 = vpop.eup %1945  ;;  %v967_v10 = vmul.f32 %v1940_v28, %v959_v57  ;;  %1971 = vpow2.f32 %v1077_v36  ;;  %v1250_v58 = vmul.f32 1.442695, %v1242_v38  ;;  %v1356_v26 = vsub.f32 %v2627_v51, %v2495_v30 }
 0x1d9   : > { %v1948_v31 = vpop.eup %1947  ;;  %v952_v11 = vadd.f32 %v1944_v49, %v1942_v55  ;;  %1973 = vpow2.f32 %v1185_v32  ;;  %v1252_v23 = vmul.f32 1.442695, %v1243_v21  ;;  %v1357_v18 = vsub.f32 %v2530_v48, %v2545_v37 }
 0x1da   : > { %v1950_v62 = vpop.eup %1949  ;;  %v837_v2 = vmax.f32 %v2658_v5, %v2457_v56  ;;  %v1179_v27 = vsub.f32 %v2513_v61, %v2552_v46  ;;  %1975 = vpow2.f32 %v1187_v25  ;;  %v1307_v16 = vmul.f32 1.442695, %v1299_v29 }
 0x1db   : > { %v1952_v30 = vpop.eup %1951  ;;  %v912_v51 = vmul.f32 %v1942_v55, %v2327_v41  ;;  %v968_v50 = vmul.f32 %v1944_v49, %v2210_v12  ;;  %1977 = vpow2.f32 %v1132_v4  ;;  %v1309_v7 = vmul.f32 1.442695, %v1300_v0  ;;  %v2691_v55 = vld [vmem:[#allocation2 + $0x4a] sm:$0xff] }
 0x1dc   : > { %v1954_v60 = vpop.eup %1953  ;;  %v975_v37 = vadd.f32 %v967_v10, %v911_v3  ;;  %v1015_v48 = vadd.f32 %v1952_v30, %v951_v15  ;;  %1979 = vpow2.f32 %v1250_v58  ;;  %v1364_v28 = vmul.f32 1.442695, %v1356_v26 }
 0x1dd   : > { %v1956_v36 = vpop.eup %1955  ;;  %v838_v5 = vmax.f32 %v2663_v22, %v2679_v47  ;;  %v1016_v38 = vadd.f32 %v1954_v60, %v952_v11  ;;  %1981 = vpow2.f32 %v1252_v23  ;;  %v1366_v61 = vmul.f32 1.442695, %v1357_v18 }
 0x1de   : > { %v1958_v57 = vpop.eup %1957  ;;  %v913_v32 = vmul.f32 %v1946_v33, %v2330_v42  ;;  %v1039_v41 = vmul.f32 %v1952_v30, %v2333_v44  ;;  %v1189_v21 = vmul.f32 1.442695, %v1179_v27  ;;  %1983 = vpow2.f32 %v1307_v16 }
 0x1df   : > { %v1960_v13 = vpop.eup %1959  ;;  %v914_v3 = vmul.f32 %v1950_v62, %v2356_v53  ;;  %v969_v25 = vmul.f32 %v1948_v31, %v2213_v14  ;;  %v976_v29 = vadd.f32 %v968_v50, %v912_v51  ;;  %1985 = vpow2.f32 %v1309_v7 }
 0x1e0   : > { %v1962_v22 = vpop.eup %1961  ;;  %v970_v49 = vmul.f32 %v1956_v36, %v2216_v17  ;;  %v1047_v15 = vadd.f32 %v1039_v41, %v975_v37  ;;  %v1087_v4 = vadd.f32 %v1960_v13, %v1015_v48  ;;  %1987 = vpow2.f32 %v1364_v28  ;;  %v3075_v37 = vld [vmem:[#allocation14_spill] sm:$0xff] }
 0x1e1   : > { %v1964_v42 = vpop.eup %1963  ;;  %v2700_v44 = vmax.f32 %v775_v63, %v2581_v39  ;;  %v1040_v0 = vmul.f32 %v1954_v60, %v2343_v9  ;;  %v1088_v53 = vadd.f32 %v1962_v22, %v1016_v38  ;;  %1989 = vpow2.f32 %v1366_v61 }
 0x1e2   : > { %v1966_v10 = vpop.eup %1965  ;;  %v2704_v58 = vmax.f32 %v837_v2, %v2633_v40  ;;  %v2707_v26 = vmax.f32 %v838_v5, %v2691_v55  ;;  %v1104_v11 = vmul.f32 %v1960_v13, %v2336_v45  ;;  %v953_v23 = vadd.f32 %v1948_v31, %v1946_v33  ;;  %v3074_v2 = vld [vmem:[#allocation5_spill] sm:$0xff]  ;;  %v3077_v13 = vld [vmem:[#allocation19_spill] sm:$0xff] }
 0x1e3   : > { %v1968_v18 = vpop.eup %1967  ;;  %v977_v27 = vadd.f32 %v969_v25, %v913_v32  ;;  %v1048_v16 = vadd.f32 %v1040_v0, %v976_v29  ;;  %1991 = vpow2.f32 %v1189_v21  ;;  %v1123_v63 = vsub.f32 %v2273_v20, %v2591_v54  ;;  %v3076_v5 = vld [vmem:[#allocation17_spill] sm:$0xff] }
 0x1e4   : > { %v1970_v9 = vpop.eup %1969  ;;  %v978_v30 = vadd.f32 %v970_v49, %v914_v3  ;;  %v1112_v51 = vadd.f32 %v1104_v11, %v1047_v15  ;;  %v1144_v50 = vadd.f32 %v1968_v18, %v1087_v4  ;;  %v1172_v7 = vmul.f32 %v3074_v2, %v2520_v8 }
 0x1e5   : > { %v1972_v60 = vpop.eup %1971  ;;  %v1105_v48 = vmul.f32 %v1962_v22, %v3075_v37  ;;  %v1145_v28 = vadd.f32 %v1970_v9, %v1088_v53  ;;  %v954_v45 = vadd.f32 %v1956_v36, %v1950_v62  ;;  %v1134_v33 = vmul.f32 1.442695, %v1123_v63  ;;  %v3078_v53 = vld [vmem:[#allocation45_spill] sm:$0xff]  ;;  %v3080_v63 = vld [vmem:[#allocation15_spill] sm:$0xff] }
 0x1e6   : > { %v1974_v31 = vpop.eup %1973  ;;  %v1041_v38 = vmul.f32 %v1958_v57, %v3076_v5  ;;  %v1153_v61 = vmul.f32 %v1968_v18, %v2210_v12  ;;  %v1017_v32 = vadd.f32 %v1958_v57, %v953_v23  ;;  %v1180_v41 = vsub.f32 %v1172_v7, %v2591_v54  ;;  %v3079_v18 = vld [vmem:[#allocation18_spill] sm:$0xff] }
 0x1e7   : > { %v1976_v21 = vpop.eup %1975  ;;  %v1042_v3 = vmul.f32 %v1964_v42, %v3077_v13  ;;  %v1113_v25 = vadd.f32 %v1105_v48, %v1048_v16  ;;  %v1201_v29 = vadd.f32 %v1974_v31, %v1144_v50  ;;  %1993 = vpow2.f32 %v1134_v33 }
 0x1e8   : > { %v2719_v49 = vpop.eup %1977  ;;  %v2721_v22 = vadd.f32 %v1041_v38, %v977_v27  ;;  %v1161_v62 = vadd.f32 %v1153_v61, %v1112_v51  ;;  %v1202_v36 = vadd.f32 %v1976_v21, %v1145_v28  ;;  %v1191_v15 = vmul.f32 1.442695, %v1180_v41  ;;  %v3081_v51 = vld [vmem:[#allocation23_spill] sm:$0xff]  ;;  %v3082_v61 = vld [vmem:[#allocation20_spill] sm:$0xff] }
 0x1e9   : > { %v1980_v4 = vpop.eup %1979  ;;  %v2723_v0 = vadd.f32 %v1042_v3, %v978_v30  ;;  %v1154_v12 = vmul.f32 %v1970_v9, %v2213_v14  ;;  %v1018_v57 = vadd.f32 %v1964_v42, %v954_v45  ;;  %v1244_v11 = vsub.f32 %v3078_v53, %v2552_v46 }
 0x1ea   : > { %v1982_v23 = vpop.eup %1981  ;;  %v1106_v16 = vmul.f32 %v1966_v10, %v3079_v18  ;;  %v1218_v50 = vmul.f32 %v1974_v31, %v3080_v63  ;;  %v1266_v7 = vadd.f32 %v1980_v4, %v1201_v29  ;;  %v1089_v27 = vadd.f32 %v1966_v10, %v1017_v32  ;;  %v3083_v32 = vld [vmem:[#allocation16_spill] sm:$0xff] }
 0x1eb   : > { %v1984_v37 = vpop.eup %1983  ;;  %v1107_v48 = vmul.f32 %v1972_v60, %v3081_v51  ;;  %v1162_v28 = vadd.f32 %v1154_v12, %v1113_v25  ;;  %v1267_v33 = vadd.f32 %v1982_v23, %v1202_v36  ;;  %v1245_v30 = vsub.f32 %v2653_v24, %v2591_v54  ;;  %v3084_v24 = vld [vmem:[#allocation21_spill] sm:$0xff] }
 0x1ec   : > { %v1986_v9 = vpop.eup %1985  ;;  %v1226_v42 = vadd.f32 %v1218_v50, %v1161_v62  ;;  %v1323_v45 = vadd.f32 %v1984_v37, %v1266_v7  ;;  %1995 = vpow2.f32 %v1191_v15  ;;  %v1254_v5 = vmul.f32 1.442695, %v1244_v11 }
 0x1ed   : > { %v1988_v38 = vpop.eup %1987  ;;  %v1219_v41 = vmul.f32 %v1976_v21, %v3082_v61  ;;  %v1324_v13 = vadd.f32 %v1986_v9, %v1267_v33  ;;  %v1090_v31 = vadd.f32 %v1972_v60, %v1018_v57  ;;  %v1256_v3 = vmul.f32 1.442695, %v1245_v30  ;;  %v3085_v57 = vld [vmem:[#allocation4_spill] sm:$0xff] }
 0x1ee   : > { %v1990_v10 = vpop.eup %1989  ;;  %v1283_v29 = vmul.f32 %v1980_v4, %v3083_v32  ;;  %v1380_v53 = vadd.f32 %v1988_v38, %v1323_v45  ;;  %v1146_v25 = vadd.f32 %v2719_v49, %v1089_v27  ;;  %1997 = vpow2.f32 %v1254_v5  ;;  %v3086_v27 = vld [vmem:[#allocation47_spill] sm:$0xff]  ;;  %v3088_v5 = vld [vmem:[#allocation8_spill] sm:$0xff] }
 0x1ef   : > { %v1227_v36 = vadd.f32 %v1219_v41, %v1162_v28  ;;  %v1284_v12 = vmul.f32 %v1982_v23, %v3084_v24  ;;  %v1381_v62 = vadd.f32 %v1990_v10, %v1324_v13  ;;  %1999 = vpow2.f32 %v1256_v3  ;;  %v3090_v3 = vld [vmem:[#allocation48_spill] sm:$0xff] }
 0x1f0   : > { %v1992_v15 = vpop.eup %1991  ;;  %v1291_v11 = vadd.f32 %v1283_v29, %v1226_v42  ;;  %2001 = vrcp.f32 %v1380_v53  ;;  %v1301_v21 = vsub.f32 %v2273_v20, %v2552_v46  ;;  %v1302_v60 = vsub.f32 %v2434_v6, %v2591_v54 }
 0x1f1   : > { %v1332_v4 = vmul.f32 %v1984_v37, %v2213_v14  ;;  %2003 = vrcp.f32 %v1381_v62  ;;  %v1350_v18 = vmul.f32 %v3085_v57, %v2520_v8  ;;  %v1351_v23 = vmul.f32 %v3074_v2, %v2581_v39  ;;  %v3087_v2 = vld [vmem:[#allocation42_spill] sm:$0xff] }
 0x1f2   : > { %v1311_v63 = vmul.f32 1.442695, %v1301_v21  ;;  %v1313_v50 = vmul.f32 1.442695, %v1302_v60  ;;  %v799_v7 = vmax.f32 %v2642_v43, %v2542_v34  ;;  %v800_v51 = vmax.f32 %v2700_v44, %v3086_v27  ;;  %v3089_v44 = vld [vmem:[#allocation10_spill] sm:$0xff] }
 0x1f3   : > { %v1292_v28 = vadd.f32 %v1284_v12, %v1227_v36  ;;  %v1333_v33 = vmul.f32 %v1986_v9, %v2216_v17  ;;  %v1358_v14 = vsub.f32 %v1350_v18, %v2552_v46  ;;  %v1359_v37 = vsub.f32 %v1351_v23, %v2591_v54  ;;  %v3091_v60 = vld [vmem:[#allocation22_spill] sm:$0xff] }
 0x1f4   : > { %v1994_v30 = vpop.eup %1993  ;;  %2005 = vpow2.f32 %v1311_v63  ;;  %v808_v42 = vmax.f32 %v799_v7, %v2434_v6  ;;  %v809_v45 = vmax.f32 %v800_v51, %v3087_v2  ;;  %v861_v61 = vmul.f32 %v3088_v5, %v3086_v27 }
 0x1f5   : > { %v1147_v43 = vadd.f32 %v1994_v30, %v1090_v31  ;;  %2007 = vpow2.f32 %v1313_v50  ;;  %v1368_v41 = vmul.f32 1.442695, %v1358_v14  ;;  %v862_v13 = vmul.f32 %v3089_v44, %v2563_v35  ;;  %v3093_v50 = vld [vmem:[#allocation24_spill] sm:$0xff] }
 0x1f6   : > { %v1370_v9 = vmul.f32 1.442695, %v1359_v37  ;;  %v817_v46 = vmax.f32 %v808_v42, %v2581_v39  ;;  %v818_v54 = vmax.f32 %v809_v45, %v3090_v3  ;;  %v869_v32 = vsub.f32 %v861_v61, %v2704_v58  ;;  %v2779_v37 = vld [vmem:[#allocation3 + $0x21] sm:$0xff] }
 0x1f7   : > { %v1114_v29 = vadd.f32 %v1106_v16, %v2721_v22  ;;  %v1115_v53 = vadd.f32 %v1107_v48, %v2723_v0  ;;  %v1340_v36 = vadd.f32 %v1332_v4, %v1291_v11  ;;  %2009 = vpow2.f32 %v1368_v41  ;;  %v3092_v22 = vld [vmem:[#allocation25_spill] sm:$0xff] }
 0x1f8   : > { %v1341_v24 = vadd.f32 %v1333_v33, %v1292_v28  ;;  %2011 = vpow2.f32 %v1370_v9  ;;  %v826_v31 = vmax.f32 %v817_v46, %v3086_v27  ;;  %v870_v12 = vsub.f32 %v862_v13, %v2707_v26  ;;  %v3096_v9 = vld [vmem:[#allocation46_spill] sm:$0xff] }
 0x1f9   : > { %v1996_v62 = vpop.eup %1995  ;;  %v1155_v21 = vmul.f32 %v2719_v49, %v2216_v17  ;;  %v1404_v57 = vmul.f32 %v1988_v38, %v3091_v60  ;;  %v827_v18 = vmax.f32 %v818_v54, %v2563_v35  ;;  %v883_v23 = vmul.f32 1.442695, %v869_v32  ;;  %v3094_v38 = vld [vmem:[#allocation7_spill] sm:$0xff] }
 0x1fa   : > { %v1405_v16 = vmul.f32 %v1990_v10, %v3092_v22  ;;  %v1203_v0 = vadd.f32 %v1992_v15, %v1146_v25  ;;  %v1204_v48 = vadd.f32 %v1996_v62, %v1147_v43  ;;  %v835_v11 = vmax.f32 %v826_v31, %v3087_v2 }
 0x1fb   : > { %v1998_v4 = vpop.eup %1997  ;;  %v1163_v63 = vadd.f32 %v1155_v21, %v1114_v29  ;;  %v1220_v7 = vmul.f32 %v1992_v15, %v3093_v50  ;;  %v1412_v51 = vadd.f32 %v1404_v57, %v1340_v36  ;;  %v836_v28 = vmax.f32 %v827_v18, %v2413_v52  ;;  %v3095_v15 = vld [vmem:[#allocation9_spill] sm:$0xff] }
 0x1fc   : > { %v2000_v33 = vpop.eup %1999  ;;  %v1413_v17 = vadd.f32 %v1405_v16, %v1341_v24  ;;  %v2775_v49 = vmax.f32 %v835_v11, %v3090_v3  ;;  %v860_v14 = vmul.f32 %v3094_v38, %v2542_v34  ;;  %v885_v10 = vmul.f32 1.442695, %v870_v12 }
 0x1fd   : > { %v2002_v25 = vpop.eup %2001  ;;  %v1156_v42 = vmul.f32 %v2779_v37, %v1994_v30  ;;  %v2783_v45 = vmax.f32 %v836_v28, %v2579_v1  ;;  %2013 = vpow2.f32 %v883_v23  ;;  %v987_v61 = vmul.f32 %v3095_v15, %v2520_v8  ;;  %v3097_v8 = vld [vmem:[#allocation11_spill] sm:$0xff] }
 0x1fe   : > { %v2004_v43 = vpop.eup %2003  ;;  %v1268_v41 = vadd.f32 %v1998_v4, %v1203_v0  ;;  %v1269_v13 = vadd.f32 %v2000_v33, %v1204_v48  ;;  %v867_v46 = vsub.f32 %v3096_v9, %v2775_v49  ;;  %v931_v54 = vsub.f32 %v2273_v20, %v2775_v49 }
 0x1ff   : > { %v1428_v32 = vmul.f32 %v2002_v25, %v1412_v51  ;;  %v1429_v29 = vmul.f32 %v2004_v43, %v1413_v17  ;;  %v868_v30 = vsub.f32 %v860_v14, %v2783_v45  ;;  %v932_v36 = vsub.f32 %v2434_v6, %v2783_v45  ;;  %v3098_v17 = vld [vmem:[#allocation26_spill] sm:$0xff] }
 0x200   : > { %v879_v24 = vmul.f32 1.442695, %v867_v46  ;;  %2015 = vpow2.f32 %v885_v10  ;;  %v943_v31 = vmul.f32 1.442695, %v931_v54  ;;  %v988_v12 = vmul.f32 %v3097_v8, %v2581_v39  ;;  %v3100_v46 = vld [vmem:[#allocation27_spill] sm:$0xff] }
 0x201   : > { %v2006_v21 = vpop.eup %2005  ;;  %v1436_v60 = vpack.c.bf16 %v1429_v29, %v1428_v32  ;;  %v881_v57 = vmul.f32 1.442695, %v868_v30  ;;  %v945_v18 = vmul.f32 1.442695, %v932_v36  ;;  %v995_v23 = vsub.f32 %v987_v61, %v2775_v49  ;;  %v3099_v61 = vld [vmem:[#allocation6_spill] sm:$0xff]  ;;  %v3101_v29 = vld [vmem:[#allocation29_spill] sm:$0xff] }
 0x202   : > { %v2008_v20 = vpop.eup %2007  ;;  %v1164_v22 = vadd.f32 %v1156_v42, %v1115_v53  ;;  %v1325_v16 = vadd.f32 %v2006_v21, %v1268_v41  ;;  %2017 = vpow2.f32 %v879_v24  ;;  %v996_v0 = vsub.f32 %v988_v12, %v2783_v45 }
 0x203   : > { %1879 = vmatprep.mubr.bf16.mxu0 %v1436_v60  ;;  %v1326_v48 = vadd.f32 %v2008_v20, %v1269_v13  ;;  %2019 = vpow2.f32 %v881_v57  ;;  %v933_v11 = vsub.f32 %v3087_v2, %v2704_v58  ;;  %v1007_v50 = vmul.f32 1.442695, %v995_v23 }
 0x204   : > { %v2010_v51 = vpop.eup %2009  ;;  %v1228_v28 = vadd.f32 %v1220_v7, %v1163_v63  ;;  %v1221_v14 = vmul.f32 %v1996_v62, %v3098_v17  ;;  %v934_v10 = vsub.f32 %v2413_v52, %v2707_v26  ;;  %2021 = vpow2.f32 %v943_v31 }
 0x205   : > { %v2012_v53 = vpop.eup %2011  ;;  %v1382_v25 = vadd.f32 %v2010_v51, %v1325_v16  ;;  %2023 = vpow2.f32 %v945_v18  ;;  %v1009_v42 = vmul.f32 1.442695, %v996_v0  ;;  %v1059_v43 = vmul.f32 %v3099_v61, %v2542_v34 }
 0x206   : > { %v1229_v41 = vadd.f32 %v1221_v14, %v1164_v22  ;;  %v1383_v13 = vadd.f32 %v2012_v53, %v1326_v48  ;;  %2025 = vpow2.f32 %v1007_v50  ;;  %v1060_v9 = vmul.f32 %v3094_v38, %v3086_v27  ;;  %v2822_v22 = vld [vmem:[#allocation3 + $0x29] sm:$0xff] }
 0x207   : > { %2027 = vrcp.f32 %v1382_v25  ;;  %v947_v63 = vmul.f32 1.442695, %v933_v11  ;;  %v1067_v62 = vsub.f32 %v1059_v43, %v2775_v49  ;;  %v1124_v7 = vsub.f32 %v2434_v6, %v2775_v49 }
 0x208   : > { %v1285_v54 = vmul.f32 %v1998_v4, %v3100_v46  ;;  %2029 = vrcp.f32 %v1383_v13  ;;  %v1068_v32 = vsub.f32 %v1060_v9, %v2783_v45  ;;  %v1125_v34 = vsub.f32 %v3087_v2, %v2783_v45  ;;  %v3103_v9 = vld [vmem:[#allocation34_spill] sm:$0xff] }
 0x209   : > { %v1286_v30 = vmul.f32 %v2000_v33, %v3101_v29  ;;  %v2815_v36 = vmul.f32 1.442695, %v934_v10  ;;  %2031 = vpow2.f32 %v1009_v42  ;;  %v1079_v24 = vmul.f32 1.442695, %v1067_v62 }
 0x20a   : > { %v2817_v31 = vpop.eup %2013  ;;  %v1293_v12 = vadd.f32 %v1285_v54, %v1228_v28  ;;  %v1081_v60 = vmul.f32 1.442695, %v1068_v32  ;;  %v1136_v57 = vmul.f32 1.442695, %v1124_v7  ;;  %v1138_v6 = vmul.f32 1.442695, %v1125_v34 }
 0x20b   : > { %v1294_v18 = vadd.f32 %v1286_v30, %v1229_v41  ;;  %v1334_v4 = vmul.f32 %v2779_v37, %v2006_v21  ;;  %2033 = vpow2.f32 %v1079_v24  ;;  %v1173_v23 = vmul.f32 %v3095_v15, %v2581_v39 }
 0x20c   : > { %v1335_v33 = vmul.f32 %v2822_v22, %v2008_v20  ;;  %2035 = vpow2.f32 %v1081_v60  ;;  %v1174_v16 = vmul.f32 %v3097_v8, %v3090_v3  ;;  %v1238_v0 = vmul.f32 %v3099_v61, %v3086_v27  ;;  %v3102_v61 = vld [vmem:[#allocation30_spill] sm:$0xff] }
 0x20d   : > { %v2829_v48 = vpop.eup %2015  ;;  %2037 = vpow2.f32 %v1136_v57  ;;  %v1181_v21 = vsub.f32 %v1173_v23, %v2775_v49  ;;  %v1239_v11 = vmul.f32 %v3094_v38, %v2563_v35  ;;  %v1303_v39 = vsub.f32 %v3087_v2, %v2775_v49 }
 0x20e   : > { %v1342_v50 = vadd.f32 %v1334_v4, %v1293_v12  ;;  %2039 = vpow2.f32 %v1138_v6  ;;  %v1182_v20 = vsub.f32 %v1174_v16, %v2783_v45  ;;  %v1246_v28 = vsub.f32 %v1238_v0, %v2775_v49  ;;  %v3104_v12 = vld [vmem:[#allocation28_spill] sm:$0xff] }
 0x20f   : > { %v2018_v17 = vpop.eup %2017  ;;  %v1343_v14 = vadd.f32 %v1335_v33, %v1294_v18  ;;  %v1193_v27 = vmul.f32 1.442695, %v1181_v21  ;;  %v1247_v10 = vsub.f32 %v1239_v11, %v2783_v45  ;;  %v1304_v25 = vsub.f32 %v2413_v52, %v2783_v45 }
 0x210   : > { %v2020_v42 = vpop.eup %2019  ;;  %v1406_v43 = vmul.f32 %v2010_v51, %v3102_v61  ;;  %2041 = vpow2.f32 %v947_v63  ;;  %v1195_v41 = vmul.f32 1.442695, %v1182_v20  ;;  %v1258_v2 = vmul.f32 1.442695, %v1246_v28  ;;  %v3105_v63 = vld [vmem:[#allocation31_spill] sm:$0xff] }
 0x211   : > { %v2022_v13 = vpop.eup %2021  ;;  %v1407_v62 = vmul.f32 %v2012_v53, %v3103_v9  ;;  %2043 = vpow2.f32 %v1193_v27  ;;  %v1260_v7 = vmul.f32 1.442695, %v1247_v10  ;;  %v1315_v46 = vmul.f32 1.442695, %v1303_v39  ;;  %v3107_v10 = vld [vmem:[#allocation12_spill] sm:$0xff] }
 0x212   : > { %v2024_v54 = vpop.eup %2023  ;;  %v1414_v32 = vadd.f32 %v1406_v43, %v1342_v50  ;;  %v955_v34 = vadd.f32 %v2022_v13, %v2018_v17  ;;  %2045 = vpow2.f32 %v1195_v41  ;;  %v1317_v29 = vmul.f32 1.442695, %v1304_v25  ;;  %v3106_v50 = vld [vmem:[#allocation33_spill] sm:$0xff]  ;;  %v3108_v41 = vld [vmem:[#allocation32_spill] sm:$0xff] }
 0x213   : > { %v2026_v30 = vpop.eup %2025  ;;  %v1415_v24 = vadd.f32 %v1407_v62, %v1343_v14  ;;  %v915_v60 = vmul.f32 %v2018_v17, %v3104_v12  ;;  %v956_v57 = vadd.f32 %v2024_v54, %v2020_v42  ;;  %2047 = vpow2.f32 %v1258_v2 }
 0x214   : > { %v2028_v51 = vpop.eup %2027  ;;  %v916_v6 = vmul.f32 %v2020_v42, %v3105_v63  ;;  %v971_v18 = vmul.f32 %v2779_v37, %v2022_v13  ;;  %2049 = vpow2.f32 %v1260_v7  ;;  %v1352_v53 = vmul.f32 %v3095_v15, %v3090_v3 }
 0x215   : > { %v2030_v4 = vpop.eup %2029  ;;  %v972_v23 = vmul.f32 %v2822_v22, %v2024_v54  ;;  %v1019_v33 = vadd.f32 %v2026_v30, %v955_v34  ;;  %2051 = vpow2.f32 %v1315_v46  ;;  %v1353_v16 = vmul.f32 %v3097_v8, %v2579_v1 }
 0x216   : > { %v2032_v0 = vpop.eup %2031  ;;  %v1430_v21 = vmul.f32 %v2028_v51, %v1414_v32  ;;  %v1431_v11 = vmul.f32 %v2030_v4, %v1415_v24  ;;  %2053 = vpow2.f32 %v1317_v29  ;;  %v1360_v39 = vsub.f32 %v1352_v53, %v2775_v49  ;;  %v3110_v32 = vld [vmem:[#allocation36_spill] sm:$0xff]  ;;  %v3112_v51 = vld [vmem:[#allocation39_spill] sm:$0xff]  ;;  %v3113_v53 = vld [vmem:[#allocation37_spill] sm:$0xff] }
 0x217   : > { %2055 = vpow2.f32 %v2815_v36  ;;  %v1020_v37 = vadd.f32 %v2032_v0, %v956_v57  ;;  %v2855_v20 = vmul.f32 %v3094_v38, %v3106_v50  ;;  %v1361_v28 = vsub.f32 %v1353_v16, %v2783_v45  ;;  %v3109_v38 = vld [vmem:[#allocation13_spill] sm:$0xff] }
 0x218   : > { %v2034_v17 = vpop.eup %2033  ;;  %v1437_v14 = vpack.c.bf16 %v1431_v11, %v1430_v21  ;;  %v979_v27 = vadd.f32 %v971_v18, %v915_v60  ;;  %v989_v25 = vmul.f32 %v3107_v10, %v3090_v3  ;;  %v1372_v42 = vmul.f32 1.442695, %v1360_v39  ;;  %v3111_v60 = vld [vmem:[#allocation35_spill] sm:$0xff] }
 0x219   : > { %v2036_v61 = vpop.eup %2035  ;;  %v980_v43 = vadd.f32 %v972_v23, %v916_v6  ;;  %v1043_v49 = vmul.f32 %v2026_v30, %v3108_v41  ;;  %v1091_v2 = vadd.f32 %v2034_v17, %v1019_v33  ;;  %v1374_v36 = vmul.f32 1.442695, %v1361_v28 }
 0x21a   : > { %v2038_v13 = vpop.eup %2037  ;;  %1880 = vmatmul.mubr.bf16.vlgmr.msra.gmra.mxu0 %v1437_v14  ;;  %v1092_v9 = vadd.f32 %v2036_v61, %v1020_v37  ;;  %2057 = vpow2.f32 %v1372_v42  ;;  %v990_v45 = vmul.f32 %v3109_v38, %v2579_v1  ;;  %v997_v62 = vsub.f32 %v989_v25, %v2704_v58 }
 0x21b   : > { %v2040_v7 = vpop.eup %2039  ;;  %v1126_v3 = vsub.f32 %v2413_v52, %v2704_v58  ;;  %v1148_v46 = vadd.f32 %v2038_v13, %v1091_v2  ;;  %2059 = vpow2.f32 %v1374_v36  ;;  %v2868_v54 = vmul.f32 %v3109_v38, %v2691_v55 }
 0x21c   : > { %v1044_v34 = vmul.f32 %v2032_v0, %v3110_v32  ;;  %v1051_v29 = vadd.f32 %v1043_v49, %v979_v27  ;;  %v1149_v30 = vadd.f32 %v2040_v7, %v1092_v9  ;;  %v998_v24 = vsub.f32 %v990_v45, %v2707_v26  ;;  %v3114_v0 = vld [vmem:[#allocation38_spill] sm:$0xff] }
 0x21d   : > { %v2042_v12 = vpop.eup %2041  ;;  %v2874_v57 = vmul.f32 %v2817_v31, %v3111_v60  ;;  %v2878_v52 = vmul.f32 %v2829_v48, %v3112_v51  ;;  %v1011_v63 = vmul.f32 1.442695, %v997_v62  ;;  %v1061_v55 = vmul.f32 %v3088_v5, %v2563_v35  ;;  %v3116_v51 = vld [vmem:[#allocation44_spill] sm:$0xff] }
 0x21e   : > { %v2044_v6 = vpop.eup %2043  ;;  %v1052_v18 = vadd.f32 %v1044_v34, %v980_v43  ;;  %v1108_v4 = vmul.f32 %v2034_v17, %v3113_v53  ;;  %v1013_v23 = vmul.f32 1.442695, %v998_v24  ;;  %v1062_v33 = vmul.f32 %v3089_v44, %v2598_v59  ;;  %v3115_v24 = vld [vmem:[#allocation40_spill] sm:$0xff] }
 0x21f   : > { %v2046_v16 = vpop.eup %2045  ;;  %v1109_v21 = vmul.f32 %v2036_v61, %v3114_v0  ;;  %v1140_v11 = vmul.f32 1.442695, %v1126_v3  ;;  %v1205_v39 = vadd.f32 %v2044_v6, %v1148_v46  ;;  %v1069_v37 = vsub.f32 %v1061_v55, %v2704_v58  ;;  %v2892_v61 = vld [vmem:[#allocation3 + $0x31] sm:$0xff] }
 0x220   : > { %v2048_v50 = vpop.eup %2047  ;;  %v1116_v28 = vadd.f32 %v1108_v4, %v1051_v29  ;;  %v1206_v14 = vadd.f32 %v2046_v16, %v1149_v30  ;;  %2061 = vpow2.f32 %v1011_v63  ;;  %v1070_v35 = vsub.f32 %v1062_v33, %v2707_v26 }
 0x221   : > { %v2050_v27 = vpop.eup %2049  ;;  %v1270_v25 = vadd.f32 %v2048_v50, %v1205_v39  ;;  %2063 = vpow2.f32 %v1013_v23  ;;  %v1083_v17 = vmul.f32 1.442695, %v1069_v37  ;;  %v1127_v42 = vsub.f32 %v2457_v56, %v2707_v26 }
 0x222   : > { %v2890_v43 = vpop.eup %2051  ;;  %v1117_v41 = vadd.f32 %v1109_v21, %v1052_v18  ;;  %v1157_v49 = vmul.f32 %v2822_v22, %v2038_v13  ;;  %v1271_v2 = vadd.f32 %v2050_v27, %v1206_v14  ;;  %v1085_v36 = vmul.f32 1.442695, %v1070_v35  ;;  %v2099_v18 = vld [vmem:[#allocation2 + $0x41] sm:$0xff] }
 0x223   : > { %v2895_v9 = vpop.eup %2053  ;;  %v2898_v45 = vmul.f32 %v2042_v12, %v2892_v61  ;;  %2065 = vpow2.f32 %v1140_v11  ;;  %v1158_v62 = vmul.f32 %v2040_v7, %v2892_v61  ;;  %v957_v3 = vadd.f32 %v2042_v12, %v2817_v31 }
 0x224   : > { %v2056_v56 = vpop.eup %2055  ;;  %v1165_v46 = vadd.f32 %v1157_v49, %v1116_v28  ;;  %v1327_v32 = vadd.f32 %v2890_v43, %v1270_v25  ;;  %v1328_v34 = vadd.f32 %v2895_v9, %v1271_v2  ;;  %2067 = vpow2.f32 %v1083_v17  ;;  %v3117_v28 = vld [vmem:[#allocation41_spill] sm:$0xff] }
 0x225   : > { %2069 = vpow2.f32 %v1085_v36  ;;  %v1142_v22 = vmul.f32 1.442695, %v1127_v42  ;;  %v1175_v13 = vmul.f32 %v3107_v10, %v2579_v1  ;;  %v1176_v29 = vmul.f32 %v3109_v38, %v2633_v40  ;;  %v2926_v25 = vld [vmem:[#allocation3 + $0x39] sm:$0xff] }
 0x226   : > { %v1166_v30 = vadd.f32 %v1158_v62, %v1117_v41  ;;  %v1222_v7 = vmul.f32 %v2044_v6, %v3115_v24  ;;  %v1240_v31 = vmul.f32 %v3088_v5, %v2598_v59  ;;  %v1241_v12 = vmul.f32 %v3089_v44, %v2655_v19  ;;  %v2934_v2 = vld [vmem:[#allocation3 + $0x3a] sm:$0xff] }
 0x227   : > { %v2913_v60 = vpop.eup %2057  ;;  %v1223_v63 = vmul.f32 %v2046_v16, %v3116_v51  ;;  %v1183_v55 = vsub.f32 %v1175_v13, %v2704_v58  ;;  %v1184_v1 = vsub.f32 %v1176_v29, %v2707_v26  ;;  %v1305_v53 = vsub.f32 %v2099_v18, %v2704_v58  ;;  %v1095_v51 = vld [vmem:[#allocation3 + $0x40] sm:$0xff]  ;;  %v2101_v18 = vld [vmem:[#allocation3 + $0x38] sm:$0xff] }
 0x228   : > { %v2060_v4 = vpop.eup %2059  ;;  %v1384_v6 = vadd.f32 %v2913_v60, %v1327_v32  ;;  %2071 = vpow2.f32 %v1142_v22  ;;  %v1248_v59 = vsub.f32 %v1240_v31, %v2704_v58  ;;  %v1249_v23 = vsub.f32 %v1241_v12, %v2707_v26 }
 0x229   : > { %v1385_v19 = vadd.f32 %v2060_v4, %v1328_v34  ;;  %v1197_v33 = vmul.f32 1.442695, %v1183_v55  ;;  %v1199_v0 = vmul.f32 1.442695, %v1184_v1  ;;  %v1306_v16 = vsub.f32 %v2679_v47, %v2707_v26 }
 0x22a   : > { %v1230_v21 = vadd.f32 %v1222_v7, %v1165_v46  ;;  %2073 = vrcp.f32 %v1384_v6  ;;  %v958_v11 = vadd.f32 %v2056_v56, %v2829_v48  ;;  %v1262_v39 = vmul.f32 1.442695, %v1248_v59 }
 0x22b   : > { %v1231_v37 = vadd.f32 %v1223_v63, %v1166_v30  ;;  %v1287_v14 = vmul.f32 %v2048_v50, %v3117_v28  ;;  %2075 = vrcp.f32 %v1385_v19  ;;  %v1264_v35 = vmul.f32 1.442695, %v1249_v23 }
 0x22c   : > { %2077 = vpow2.f32 %v1197_v33  ;;  %v1319_v17 = vmul.f32 1.442695, %v1305_v53  ;;  %v1354_v42 = vmul.f32 %v3107_v10, %v2633_v40  ;;  %v1363_v47 = vsub.f32 %v2868_v54, %v2707_v26  ;;  %v2100_v54 = vld [vmem:[#allocation3 + $0x32] sm:$0xff] }
 0x22d   : > { %v2062_v41 = vpop.eup %2061  ;;  %v974_v49 = vmul.f32 %v2056_v56, %v2926_v25  ;;  %v1288_v48 = vmul.f32 %v2050_v27, %v2855_v20  ;;  %2079 = vpow2.f32 %v1199_v0  ;;  %v1321_v50 = vmul.f32 1.442695, %v1306_v16 }
 0x22e   : > { %v2064_v36 = vpop.eup %2063  ;;  %v1295_v62 = vadd.f32 %v1287_v14, %v1230_v21  ;;  %v1021_v46 = vadd.f32 %v2062_v41, %v957_v3  ;;  %2081 = vpow2.f32 %v1262_v39  ;;  %v1362_v32 = vsub.f32 %v1354_v42, %v2704_v58 }
 0x22f   : > { %v1296_v34 = vadd.f32 %v1288_v48, %v1231_v37  ;;  %v1022_v40 = vadd.f32 %v2064_v36, %v958_v11  ;;  %2083 = vpow2.f32 %v1264_v35  ;;  %v1378_v22 = vmul.f32 1.442695, %v1363_v47  ;;  %v1209_v48 = vld [vmem:[#allocation3 + $0x42] sm:$0xff] }
 0x230   : > { %v2066_v26 = vpop.eup %2065  ;;  %v1400_v56 = vmul.f32 %v2100_v54, %v3095_v15  ;;  %v1401_v20 = vmul.f32 %v3097_v8, %v2934_v2  ;;  %2085 = vpow2.f32 %v1319_v17  ;;  %v1376_v27 = vmul.f32 1.442695, %v1362_v32 }
 0x231   : > { %v2068_v13 = vpop.eup %2067  ;;  %v1336_v3 = vmul.f32 %v2890_v43, %v2892_v61  ;;  %v1337_v58 = vmul.f32 %v2895_v9, %v2926_v25  ;;  %v1038_v29 = vmul.f32 %v3109_v38, %v2934_v2  ;;  %2087 = vpow2.f32 %v1321_v50  ;;  %v3118_v43 = vld [vmem:[#allocation43_spill] sm:$0xff] }
 0x232   : > { %v2070_v30 = vpop.eup %2069  ;;  %v981_v15 = vadd.f32 %v2898_v45, %v2874_v57  ;;  %v982_v24 = vadd.f32 %v974_v49, %v2878_v52  ;;  %v1093_v8 = vadd.f32 %v2068_v13, %v1021_v46  ;;  %2089 = vpow2.f32 %v1376_v27  ;;  %v1152_v49 = vld [vmem:[#allocation3 + $0x41] sm:$0xff] }
 0x233   : > { %v1344_v7 = vadd.f32 %v1336_v3, %v1295_v62  ;;  %v1345_v31 = vadd.f32 %v1337_v58, %v1296_v34  ;;  %v1094_v12 = vadd.f32 %v2070_v30, %v1022_v40  ;;  %2091 = vpow2.f32 %v1378_v22 }
 0x234   : > { %v1045_v61 = vmul.f32 %v2062_v41, %v3118_v43  ;;  %v1408_v63 = vmul.f32 %v2913_v60, %v1400_v56  ;;  %v1409_v55 = vmul.f32 %v2060_v4, %v1401_v20  ;;  %v1046_v1 = vmul.f32 %v2064_v36, %v1038_v29  ;;  %v1395_v43 = vld [vmem:[#allocation3 + $0x4a] sm:$0xff] }
 0x235   : > { %v2072_v9 = vpop.eup %2071  ;;  %v1102_v53 = vmul.f32 %v2101_v18, %v3088_v5  ;;  %v1103_v52 = vmul.f32 %v3089_v44, %v1095_v51  ;;  %v1150_v45 = vadd.f32 %v2066_v26, %v1093_v8  ;;  %v1159_v41 = vmul.f32 %v2066_v26, %v2926_v25  ;;  %v1274_v26 = vld [vmem:[#allocation3 + $0x48] sm:$0xff] }
 0x236   : > { %v1053_v57 = vadd.f32 %v1045_v61, %v981_v15  ;;  %v1416_v59 = vadd.f32 %v1408_v63, %v1344_v7  ;;  %v1417_v23 = vadd.f32 %v1409_v55, %v1345_v31  ;;  %v1054_v19 = vadd.f32 %v1046_v1, %v982_v24 }
 0x237   : > { %v2074_v6 = vpop.eup %2073  ;;  %v1151_v33 = vadd.f32 %v2072_v9, %v1094_v12  ;;  %v1110_v16 = vmul.f32 %v2068_v13, %v1102_v53  ;;  %v1111_v60 = vmul.f32 %v2070_v30, %v1103_v52  ;;  %v1160_v62 = vmul.f32 %v2072_v9, %v1152_v49  ;;  %v1331_v12 = vld [vmem:[#allocation3 + $0x49] sm:$0xff] }
 0x238   : > { %v2076_v0 = vpop.eup %2075  ;;  %v1432_v11 = vmul.f32 %v2074_v6, %v1416_v59  ;;  %v1216_v40 = vmul.f32 %v3107_v10, %v2934_v2  ;;  %v1217_v20 = vmul.f32 %v3109_v38, %v1209_v48  ;;  %v1281_v15 = vmul.f32 %v3088_v5, %v1095_v51 }
 0x239   : > { %v2078_v21 = vpop.eup %2077  ;;  %v1433_v39 = vmul.f32 %v2076_v0, %v1417_v23  ;;  %v1118_v37 = vadd.f32 %v1110_v16, %v1053_v57  ;;  %v1119_v17 = vadd.f32 %v1111_v60, %v1054_v19  ;;  %v1282_v8 = vmul.f32 %v3089_v44, %v1274_v26  ;;  %v1934_v19 = vld [vmem:[%s3000_s5 + $0x10] sm:$0xff]  }
 0x23a   : > { %v2080_v4 = vpop.eup %2079  ;;  %v1207_v28 = vadd.f32 %v2078_v21, %v1150_v45  ;;  %v1224_v25 = vmul.f32 %v2078_v21, %v1216_v40  ;;  %v1403_v55 = vmul.f32 %v3109_v38, %v1395_v43  ;;  %v1402_v18 = vmul.f32 %v3107_v10, %v1209_v48  ;;  %1889 = vmatprep.subr.bf16.mxu1 %v1934_v19  ;;  %v1935_v10 = vld [vmem:[%s3000_s5 + $0x8] sm:$0xff]   ;;  %v1936_v38 = vld [vmem:[%s3000_s5] sm:$0xff]  }
 0x23b   : > { %v2082_v14 = vpop.eup %2081  ;;  %v1438_v35 = vpack.c.bf16 %v1433_v39, %v1432_v11  ;;  %v1208_v42 = vadd.f32 %v2080_v4, %v1151_v33  ;;  %v1167_v34 = vadd.f32 %v1159_v41, %v1118_v37  ;;  %v1168_v56 = vadd.f32 %v1160_v62, %v1119_v17  ;;  %1890 = vmatpush3.bf16.msra.mxu1 %v1934_v19  ;;  %v1803_v21 = vld [vmem:[%s2999_s4] ss:$0 sm:$0xff] }
 0x23c   : > { %v2084_v47 = vpop.eup %2083  ;;  %v1272_v50 = vadd.f32 %v2082_v14, %v1207_v28  ;;  %v1225_v58 = vmul.f32 %v2080_v4, %v1217_v20  ;;  %v1289_v2 = vmul.f32 %v2082_v14, %v1281_v15  ;;  %1891 = vmatprep.subr.bf16.mxu1 %v1935_v10 }
 0x23d   : > { %v2086_v36 = vpop.eup %2085  ;;  %1883 = vmatprep.mubr.bf16.mxu0 %v1438_v35  ;;  %v1273_v46 = vadd.f32 %v2084_v47, %v1208_v42  ;;  %v1232_v30 = vadd.f32 %v1224_v25, %v1167_v34  ;;  %v1290_v7 = vmul.f32 %v2084_v47, %v1282_v8 }
 0x23e   : > { %v2088_v32 = vpop.eup %2087  ;;  %v1329_v22 = vadd.f32 %v2086_v36, %v1272_v50  ;;  %v1233_v24 = vadd.f32 %v1225_v58, %v1168_v56  ;;  %v1338_v9 = vmul.f32 %v2086_v36, %v1152_v49 }
 0x23f   : > { %v2090_v54 = vpop.eup %2089  ;;  %v1330_v27 = vadd.f32 %v2088_v32, %v1273_v46  ;;  %v1297_v31 = vadd.f32 %v1289_v2, %v1232_v30  ;;  %v1339_v63 = vmul.f32 %v2088_v32, %v1331_v12  ;;  %1892 = vmatpush3.bf16.msra.mxu1 %v1935_v10  ;;  %v1812_v46 = vld [vmem:[%s3001_s6] ss:$0 sm:$0xff] }
 0x240   : > { %v2092_v13 = vpop.eup %2091  ;;  %v1386_v3 = vadd.f32 %v2090_v54, %v1329_v22  ;;  %v1298_v61 = vadd.f32 %v1290_v7, %v1233_v24  ;;  %v1410_v5 = vmul.f32 %v2090_v54, %v1402_v18  ;;  %1893 = vmatprep.subr.bf16.mxu1 %v1936_v38 }
 0x241   : > { %v1387_v29 = vadd.f32 %v2092_v13, %v1330_v27  ;;  %v1346_v1 = vadd.f32 %v1338_v9, %v1297_v31  ;;  %v1411_v51 = vmul.f32 %v2092_v13, %v1403_v55 }
 0x242   : > { %2093 = vrcp.f32 %v1386_v3  ;;  %v1347_v53 = vadd.f32 %v1339_v63, %v1298_v61 }
 0x243   : > { %2095 = vrcp.f32 %v1387_v29  ;;  %v1418_v57 = vadd.f32 %v1410_v5, %v1346_v1  ;;  %1894 = vmatpush3.bf16.msra.mxu1 %v1936_v38 }
 0x244   : > { %v1419_v44 = vadd.f32 %v1411_v51, %v1347_v53 }
 0x24f   : > { %v2094_v52 = vpop.eup %2093 }
 0x250   : > { %v2096_v45 = vpop.eup %2095  ;;  %v1434_v6 = vmul.f32 %v2094_v52, %v1418_v57 }
 0x251   : > { %v1435_v59 = vmul.f32 %v2096_v45, %v1419_v44 }
 0x253   : > { %v1439_v23 = vpack.c.bf16 %v1435_v59, %v1434_v6 }
 0x255   : > { %1884 = vmatmul.mubr.bf16.gmra.mxu0 %v1439_v23 }
 0x2da   : > { %v1881_v33 = vpop.f32.mrf.mxu0 }
 0x2db   : > { %v1554_v37 = vadd.f32 %v1881_v33, %v1803_v21 }
 0x2dc   : > { %v1545_v0 = vpop.f32.mrf.mxu0 }
 0x2dd   : > { %v1546_v60 = vadd.f32 %v1803_v21, %v1545_v0 }
 0x2de   : > { %v1882_v16 = vpop.f32.mrf.mxu0 }
 0x2df   : > { %v1557_v11 = vadd.f32 %v1882_v16, %v1803_v21 }
 0x2e0   : > { %v1548_v39 = vpop.f32.mrf.mxu0 }
 0x2e1   : > { %v1549_v4 = vadd.f32 %v1803_v21, %v1548_v39  ;;  %v1577_v14 = vpack.c.bf16 %v1557_v11, %v1554_v37 }
 0x2e3   : > { %v1576_v28 = vpack.c.bf16 %v1549_v4, %v1546_v60 }
 0x2e5   : > { %1895 = vmatprep.mubr.msk.bf16.mxu1 %vm1619_vm2, %v1576_v28 }
 0x2e6   : > { %1896 = vmatmul.mubr.msk.bf16.vlgmr.msra.gmra.mxu1 %vm1619_vm2, %v1577_v14 }
 0x315   : > { %v1885_v35 = vpop.f32.mrf.mxu0 }
 0x316   : > { %v1570_v50 = vadd.f32 %v1885_v35, %v1803_v21 }
 0x317   : > { %v1561_v17 = vpop.f32.mrf.mxu0 }
 0x318   : > { %v1562_v49 = vadd.f32 %v1803_v21, %v1561_v17 }
 0x319   : > { %v1886_v42 = vpop.f32.mrf.mxu0 }
 0x31a   : > { %v1573_v47 = vadd.f32 %v1886_v42, %v1803_v21 }
 0x31b   : > { %v1564_v41 = vpop.f32.mrf.mxu0 }
 0x31c   : > { %v1565_v48 = vadd.f32 %v1803_v21, %v1564_v41  ;;  %v1579_v62 = vpack.c.bf16 %v1573_v47, %v1570_v50 }
 0x31e   : > { %v1578_v36 = vpack.c.bf16 %v1565_v48, %v1562_v49 }
 0x320   : > { %1899 = vmatprep.mubr.msk.bf16.mxu1 %vm1619_vm2, %v1578_v36 }
 0x321   : > { %1900 = vmatmul.mubr.msk.bf16.gmra.mxu1 %vm1619_vm2, %v1579_v62 }
 0x3a6   : > { %v1897_v32 = vpop.f32.mrf.mxu1 }
 0x3a7   : > { %v1675_v34 = vadd.f32 %v1897_v32, %v1812_v46 }
 0x3a8   : > { %v1666_v40 = vpop.f32.mrf.mxu1 }
 0x3a9   : > { %1699 = vst.msk [vmem:[%s278_s8 + $0x10] sm:$0xff] %vm332_vm0, %v1675_v34  ;;  %v1667_v22 = vadd.f32 %v1812_v46, %v1666_v40 }
 0x3aa   : > { %v1898_v54 = vpop.f32.mrf.mxu1 }
 0x3ab   : > { %1697 = vst.msk [vmem:[%s278_s8] sm:$0xff] %vm332_vm0, %v1667_v22  ;;  %v1678_v56 = vadd.f32 %v1898_v54, %v1812_v46 }
 0x3ac   : > { %v1669_v20 = vpop.f32.mrf.mxu1 }
 0x3ad   : > { %1700 = vst.msk [vmem:[%s278_s8 + $0x18] sm:$0xff] %vm332_vm0, %v1678_v56  ;;  %v1670_v27 = vadd.f32 %v1812_v46, %v1669_v20 }
 0x3af   : > { %1698 = vst.msk [vmem:[%s278_s8 + $0x8] sm:$0xff] %vm332_vm0, %v1670_v27 }
 0x3e1   : > { %v1901_v13 = vpop.f32.mrf.mxu1 }
 0x3e2   : > { %v1691_v25 = vadd.f32 %v1901_v13, %v1812_v46 }
 0x3e3   : > { %v1682_v26 = vpop.f32.mrf.mxu1 }
 0x3e4   : > { %1703 = vst.msk [vmem:[%s278_s8 + $0x30] sm:$0xff] %vm332_vm0, %v1691_v25  ;;  %v1683_v3 = vadd.f32 %v1812_v46, %v1682_v26 }
 0x3e5   : > { %v1902_v58 = vpop.f32.mrf.mxu1 }
 0x3e6   : > { %1701 = vst.msk [vmem:[%s278_s8 + $0x20] sm:$0xff] %vm332_vm0, %v1683_v3  ;;  %v1694_v29 = vadd.f32 %v1902_v58, %v1812_v46 }
 0x3e7   : > { %v1685_v30 = vpop.f32.mrf.mxu1 }
 0x3e8   : > { %1704 = vst.msk [vmem:[%s278_s8 + $0x38] sm:$0xff] %vm332_vm0, %v1694_v29  ;;  %v1686_v15 = vadd.f32 %v1812_v46, %v1685_v30 }
 0x3ea   : > { %1702 = vst.msk [vmem:[%s278_s8 + $0x28] sm:$0xff] %vm332_vm0, %v1686_v15 }
 0x3eb PF: > { %s17_s24 = sadd.s32 1, %s2108_s24  }
 0x3ec   : > { %p14_p4 = scmp.ge.s32.totalorder %s17_s24, 4  }
 0x3ee   :  { %16 = sbr.rel (!%p14_p4) target bundleno = 1 (0x1), region = 78 }

</bundles_post_ra>
